<compile_context>
chip_gen: v6e
topology: v6e:2x2x1
jax: 0.10.0
libtpu: 0.0.40
codegen_flags: <defaults>
</compile_context>

<pallas_src>
import numpy as np
import jax
import jax.numpy as jnp
from jax import lax
from jax.experimental import pallas as pl
from jax.experimental.pallas import tpu as pltpu  # noqa: F401  (TPU backend assumed)


# --------------------------------------------------------------------------
# Config (small, deterministic, consistent with the module's __init__)
# --------------------------------------------------------------------------
VOCAB = 64
EMB = 32            # config.embeded_size == config.in_dim == rel_dim
HID_LSTM = 32       # config.LanguageEncoder.hidden_size
HIDDEN = 32         # config.hidden_dim == config.out_dim (GAT output dim)
NUM_HEADS = 4
HEAD_DIM = HIDDEN // NUM_HEADS
NUM_ANSWER = 16
SEQ = 8             # question length  (L)
MAX_WORDS = 4
N_IMG_NODES, N_IMG_EDGES = 6, 8
N_KG_NODES, N_KG_EDGES = 4, 4
N_NODES = N_IMG_NODES + N_KG_NODES          # merged graph nodes per sample = 10
N_EDGES = N_IMG_EDGES + N_KG_EDGES          # merged graph edges per sample = 12
BATCH = 2
B_PAD = 8                                   # LSTM/head batch padded to 8 sublanes
BN = BATCH * N_NODES                        # 20
BN_PAD = 24                                 # 8-aligned node rows (4 dead rows)
BE = BATCH * N_EDGES                        # 24 (already 8-aligned)
LANES = 128
# config.use_scene_graph = True  -> edge_linear / normalize branch is skipped.

# ---- weight slab row bands (all 8-aligned, 128 lanes) ----------------------
R_WIH = 0            # [32,128] LSTM W_ih
R_WHH = 32           # [32,128] LSTM W_hh
R_WZR = 64           # [64, 32] block-diag [wn ; wr]
R_ASRC = 128         # [32,  4] per-head a_src (block form)
R_ADST = 160         # [32,  4] per-head a_dst
R_AEDGE = 192        # [32,  4] per-head a_edge
R_EXP = 224          # [ 4, 32] head -> feature expand (8-row band)
R_QQ = 232           # [32, 64] packed question_edge_proj | question_node_proj
R_EP = 264           # [32, 32] edge_prj
R_MID1 = 296         # [32, 96] mid_prj rows for q_edges
R_MID2 = 328         # [32, 96] mid_prj rows for question_nodes
R_PRE = 360          # [96, 16] pre_prj (band padded to 128 rows)
W_ROWS = R_PRE + 128  # 488

# ---- activation slab row bands ---------------------------------------------
A_X = 0              # [64, 32] time-major word embeddings (row = t*8 + b)
A_MASK = 64          # [64, 32] question mask broadcast over 32 lanes
A_FEAT = 128         # [48, 64] block-diag [node_feat | edge_feat]
A_IDS_SD = 176       # [48, 24] src ids (rows 0:24) / dst ids (rows 24:48), row-constant
A_IDS_DROW = 224     # [24, 24] dst ids, column-constant (for T^T)
ACT_ROWS = 248


# --------------------------------------------------------------------------
# The fused forward kernel (one pallas_call, grid=(), 3 operands + 1 output)
# --------------------------------------------------------------------------
def _fused_forward_kernel(w_ref, b_ref, act_ref, o_ref):
    f32 = jnp.float32
    L = SEQ

    # ---- LanguageEncoder: masked single-layer LSTM (batch padded to 8) -----
    # Input projection hoisted out of the recurrence (one MXU matmul for all
    # timesteps); the L=8 recurrence is statically unrolled and every slice is
    # an aligned 8-sublane tile.
    x = act_ref[A_X:A_X + L * B_PAD, 0:EMB]                               # [64,32]
    gates_x = jnp.dot(x, w_ref[R_WIH:R_WIH + EMB, :],
                      preferred_element_type=f32) + b_ref[0:1, :]         # [64,128]
    w_hh = w_ref[R_WHH:R_WHH + HID_LSTM, :]                               # [32,128]
    h = jnp.zeros((B_PAD, HID_LSTM), f32)
    c = jnp.zeros((B_PAD, HID_LSTM), f32)
    for t in range(L):                                                    # static unroll
        g = gates_x[t * B_PAD:(t + 1) * B_PAD, :] + jnp.dot(
            h, w_hh, preferred_element_type=f32)                          # [8,128]
        mt = act_ref[A_MASK + t * B_PAD:A_MASK + (t + 1) * B_PAD, 0:HID_LSTM]
        sg = jax.nn.sigmoid(g)               # full-vreg transcendentals (EUP)
        tg = jnp.tanh(g)
        i_g = sg[:, 0 * HID_LSTM:1 * HID_LSTM]   # PyTorch gate order i,f,g,o
        f_g = sg[:, 1 * HID_LSTM:2 * HID_LSTM]
        g_g = tg[:, 2 * HID_LSTM:3 * HID_LSTM]
        o_g = sg[:, 3 * HID_LSTM:4 * HID_LSTM]
        c_new = f_g * c + i_g * g_g
        h_new = o_g * jnp.tanh(c_new)
        h = mt * h_new + (1.0 - mt) * h
        c = mt * c_new + (1.0 - mt) * c
    # h == hidden_out of the packed nn.LSTM (question_embed), rows 0:BATCH real

    # ---- GAT layer, whole batch, block-diagonal merged graphs --------------
    # z (node proj) and r (relation proj) from ONE block-diagonal matmul.
    feats = act_ref[A_FEAT:A_FEAT + BN_PAD + BE, 0:2 * EMB]               # [48,64]
    zr = jnp.dot(feats, w_ref[R_WZR:R_WZR + 2 * EMB, 0:HIDDEN],
                 preferred_element_type=f32)                              # [48,32]
    z = zr[0:BN_PAD, :]                                                   # [24,32]
    r = zr[BN_PAD:BN_PAD + BE, :]                                         # [24,32]

    # incidence matrices rebuilt in-kernel from edge endpoint ids (VPU compares)
    ids_sd = act_ref[A_IDS_SD:A_IDS_SD + 2 * BE, 0:BN_PAD].astype(jnp.int32)
    lane_n = lax.broadcasted_iota(jnp.int32, (2 * BE, BN_PAD), 1)
    ST = (lane_n == ids_sd).astype(f32)            # rows 0:24 = S, rows 24:48 = T
    T = ST[BE:2 * BE, :]                                                  # [24,24]
    ids_dr = act_ref[A_IDS_DROW:A_IDS_DROW + BN_PAD, 0:BE].astype(jnp.int32)
    row_n = lax.broadcasted_iota(jnp.int32, (BN_PAD, BE), 0)
    Tt = (row_n == ids_dr).astype(f32)                                    # [24,24]

    # zs / zd from one row-stacked matmul, sliced at 8-aligned rows
    zsd = jnp.dot(ST, z, preferred_element_type=f32)                      # [48,32]
    zs = zsd[0:BE, :]
    zd = zsd[BE:2 * BE, :]

    sc = (jnp.dot(zs, w_ref[R_ASRC:R_ASRC + HIDDEN, 0:8], preferred_element_type=f32)
          + jnp.dot(zd, w_ref[R_ADST:R_ADST + HIDDEN, 0:8], preferred_element_type=f32)
          + jnp.dot(r, w_ref[R_AEDGE:R_AEDGE + HIDDEN, 0:8], preferred_element_type=f32))
    sc = jnp.where(sc > 0, sc, 0.2 * sc)           # LeakyReLU(0.2)
    ex = jnp.exp(sc)                               # shift-free softmax (scores tiny,
                                                   # every edge is in its own denom)
    denom_node = jnp.dot(Tt, ex, preferred_element_type=f32)              # [24, 8]
    denom_edge = jnp.dot(T, denom_node, preferred_element_type=f32)       # [24, 8]
    alpha = ex / denom_edge                        # exact division (torch parity)
    alpha_full = jnp.dot(alpha, w_ref[R_EXP:R_EXP + 8, 0:HIDDEN],
                         preferred_element_type=f32)                      # [24,32]
    msg = alpha_full * zs
    nodes_out = jnp.dot(Tt, msg, preferred_element_type=f32)              # [24,32]
    nodes_out = jnp.where(nodes_out > 0, nodes_out,
                          jnp.exp(jnp.minimum(nodes_out, 0.0)) - 1.0)     # ELU

    # per-graph read-out (dgl.unbatch + sum) via in-kernel selector matmuls
    b_row = lax.broadcasted_iota(jnp.int32, (B_PAD, BN_PAD), 0)           # BN_PAD==BE
    idx = lax.broadcasted_iota(jnp.int32, (B_PAD, BN_PAD), 1)
    g_node = ((idx >= b_row * N_NODES) & (idx < (b_row + 1) * N_NODES)
              & (b_row < BATCH)).astype(f32)                              # [8,24]
    g_edge = ((idx >= b_row * N_EDGES) & (idx < (b_row + 1) * N_EDGES)
              & (b_row < BATCH)).astype(f32)                              # [8,24]
    nsum = jnp.dot(g_node, nodes_out, preferred_element_type=f32)         # [8,32]
    # TODO(synk): the reference sums graphs[i].edata['feat']; the GAT-projected
    # relation features r are used as the post-GAT edge state here.
    esum = jnp.dot(g_edge, r, preferred_element_type=f32)                 # [8,32]

    # ---- fused fusion head --------------------------------------------------
    qproj = jnp.dot(h, w_ref[R_QQ:R_QQ + HID_LSTM, 0:EMB + HIDDEN],
                    preferred_element_type=f32) + b_ref[1:2, 0:EMB + HIDDEN]
    question_edges = qproj[:, 0:EMB] + esum
    question_nodes = qproj[:, EMB:EMB + HIDDEN] + nsum
    q_edges = (jnp.dot(question_edges, w_ref[R_EP:R_EP + EMB, 0:HIDDEN],
                       preferred_element_type=f32) + b_ref[2:3, 0:HIDDEN])
    # q = concat([q_edges, question_nodes]) @ mid_w  ==  split-matmul form:
    mid = (jnp.dot(q_edges, w_ref[R_MID1:R_MID1 + HIDDEN, :], preferred_element_type=f32)
           + jnp.dot(question_nodes, w_ref[R_MID2:R_MID2 + HIDDEN, :],
                     preferred_element_type=f32)
           + b_ref[3:4, :])                                               # [8,128]
    pred = (jnp.dot(mid, w_ref[R_PRE:R_PRE + 128, :], preferred_element_type=f32)
            + b_ref[4:5, :])                                              # [8,128]
    o_ref[...] = pred.astype(o_ref.dtype)          # lane-dense, unmasked store


def fused_forward_pallas(w_slab, b_slab, act_slab):
    return pl.pallas_call(
        _fused_forward_kernel,
        out_shape=jax.ShapeDtypeStruct((B_PAD, LANES), jnp.float32),
    )(w_slab, b_slab, act_slab)


# --------------------------------------------------------------------------
# JAX glue: embedding gathers, graph merging, activation-slab assembly
# --------------------------------------------------------------------------
def uniform_init(key, shape, fan_in):
    bound = 1.0 / np.sqrt(fan_in)
    return jax.random.uniform(key, shape, jnp.float32, -bound, bound)


def graph_feat(word_ids, emb_table):
    """get_graph_feat approximation: masked mean of word embeddings per item."""
    # TODO(synk): exact get_graph_feat is an external helper; masked-mean of
    # word embeddings is the standard behaviour it implements.
    emb = jnp.take(emb_table, word_ids, axis=0)              # [B, I, W, E]
    valid = (word_ids != 0).astype(jnp.float32)[..., None]   # [B, I, W, 1]
    s = jnp.sum(emb * valid, axis=2)
    cnt = jnp.maximum(jnp.sum(valid, axis=2), 1.0)
    return s / cnt


def _build_act_slab(item, emb_table):
    question = item["question"]                               # [B, L] int32
    B, L = question.shape

    # time-major word embeddings / mask, batch padded to 8 sublanes
    seq_emb = jnp.take(emb_table, question, axis=0)           # [B, L, E]
    x_tm = jnp.transpose(seq_emb, (1, 0, 2))                  # [L, B, E]
    m_tm = jnp.transpose(item["question_mask"].astype(jnp.float32), (1, 0))
    x_blk = jnp.zeros((L, B_PAD, LANES), jnp.float32).at[:, :B, :EMB].set(x_tm)
    m_blk = jnp.zeros((L, B_PAD, LANES), jnp.float32).at[:, :B, :HID_LSTM].set(
        jnp.broadcast_to(m_tm[:, :, None], (L, B, HID_LSTM)))

    # graph features (kg + img); use_scene_graph=True -> no edge_linear branch
    kg_entity_feat = graph_feat(item["kg_entity_tensor"], emb_table)
    kg_edge_feat = graph_feat(item["kg_edge_tensor"], emb_table)
    img_node_feat = graph_feat(item["img_nodes_feature"], emb_table)
    img_edge_feat = graph_feat(item["img_edges_feature"], emb_table)
    node_feat = jnp.concatenate([img_node_feat, kg_entity_feat], axis=1)  # [B,10,E]
    edge_feat = jnp.concatenate([img_edge_feat, kg_edge_feat], axis=1)    # [B,12,E]
    nf_flat = node_feat.reshape(B * N_NODES, EMB)
    ef_flat = edge_feat.reshape(B * N_EDGES, EMB)
    feat_blk = jnp.zeros((BN_PAD + BE, LANES), jnp.float32)
    feat_blk = feat_blk.at[:B * N_NODES, 0:EMB].set(nf_flat)          # nodes, lanes 0:32
    feat_blk = feat_blk.at[BN_PAD:BN_PAD + BE, EMB:2 * EMB].set(ef_flat)  # edges, 32:64

    # merged-graph edge endpoint ids (node-id offset merge of img + kg graphs)
    # TODO(synk): build_and_merge_graph may add cross-graph merge edges in the
    # original DGL helper; here the two graphs are merged by node-id offset.
    src = jnp.concatenate(
        [item["img_node1_ids_list"], item["kg_node1_ids_list"] + N_IMG_NODES], axis=1)
    dst = jnp.concatenate(
        [item["img_node2_ids_list"], item["kg_node2_ids_list"] + N_IMG_NODES], axis=1)
    offs = (jnp.arange(B, dtype=jnp.int32) * N_NODES)[:, None]
    src_g = (src + offs).reshape(-1).astype(jnp.float32)      # [BE]
    dst_g = (dst + offs).reshape(-1).astype(jnp.float32)
    id_blk = jnp.zeros((2 * BE + BN_PAD, LANES), jnp.float32)
    id_blk = id_blk.at[0:BE, 0:BN_PAD].set(
        jnp.broadcast_to(src_g[:, None], (BE, BN_PAD)))       # row-constant src ids
    id_blk = id_blk.at[BE:2 * BE, 0:BN_PAD].set(
        jnp.broadcast_to(dst_g[:, None], (BE, BN_PAD)))       # row-constant dst ids
    id_blk = id_blk.at[2 * BE:2 * BE + BN_PAD, 0:BE].set(
        jnp.broadcast_to(dst_g[None, :], (BN_PAD, BE)))       # column-constant (for T^T)

    return jnp.concatenate([x_blk.reshape(L * B_PAD, LANES),
                            m_blk.reshape(L * B_PAD, LANES),
                            feat_blk, id_blk], axis=0)        # [248, 128]


@jax.jit
def gat_merge_graph_forward(item, emb_table, w_slab, b_slab):
    act = _build_act_slab(item, emb_table)
    out = fused_forward_pallas(w_slab, b_slab, act)
    return out[:BATCH, :NUM_ANSWER]


# --------------------------------------------------------------------------
# Host-side parameter slab packing
# --------------------------------------------------------------------------
def build_attention_matrices(a_src, a_dst, a_edge):
    """Per-head attention vectors -> block matrices [HD, heads] + expand [heads, HD]."""
    HD = NUM_HEADS * HEAD_DIM

    def block(a):
        a = np.asarray(a)
        m = np.zeros((HD, NUM_HEADS), np.float32)
        for hh in range(NUM_HEADS):
            m[hh * HEAD_DIM:(hh + 1) * HEAD_DIM, hh] = a[hh]
        return m

    expand = np.zeros((NUM_HEADS, HD), np.float32)
    for hh in range(NUM_HEADS):
        expand[hh, hh * HEAD_DIM:(hh + 1) * HEAD_DIM] = 1.0
    return block(a_src), block(a_dst), block(a_edge), expand


def pack_param_slabs(p):
    W = np.zeros((W_ROWS, LANES), np.float32)
    W[R_WIH:R_WIH + EMB, :] = np.asarray(p["lstm_w_ih"])
    W[R_WHH:R_WHH + HID_LSTM, :] = np.asarray(p["lstm_w_hh"])
    W[R_WZR:R_WZR + EMB, 0:HIDDEN] = np.asarray(p["gat_wn"])
    W[R_WZR + EMB:R_WZR + 2 * EMB, 0:HIDDEN] = np.asarray(p["gat_wr"])
    asrc_m, adst_m, aedge_m, expand_m = build_attention_matrices(
        p["a_src"], p["a_dst"], p["a_edge"])
    W[R_ASRC:R_ASRC + HIDDEN, 0:NUM_HEADS] = asrc_m
    W[R_ADST:R_ADST + HIDDEN, 0:NUM_HEADS] = adst_m
    W[R_AEDGE:R_AEDGE + HIDDEN, 0:NUM_HEADS] = aedge_m
    W[R_EXP:R_EXP + NUM_HEADS, 0:HIDDEN] = expand_m
    W[R_QQ:R_QQ + HID_LSTM, 0:EMB] = np.asarray(p["qe_w"])
    W[R_QQ:R_QQ + HID_LSTM, EMB:EMB + HIDDEN] = np.asarray(p["qn_w"])
    W[R_EP:R_EP + EMB, 0:HIDDEN] = np.asarray(p["ep_w"])
    W[R_MID1:R_MID1 + HIDDEN, 0:3 * HIDDEN] = np.asarray(p["mid_w"])[:HIDDEN]
    W[R_MID2:R_MID2 + HIDDEN, 0:3 * HIDDEN] = np.asarray(p["mid_w"])[HIDDEN:]
    W[R_PRE:R_PRE + 3 * HIDDEN, 0:NUM_ANSWER] = np.asarray(p["pre_w"])

    Bslab = np.zeros((8, LANES), np.float32)
    # PyTorch LSTM has bias_ih + bias_hh; summing them host-side is exact.
    Bslab[0, :4 * HID_LSTM] = np.asarray(p["lstm_b_ih"]) + np.asarray(p["lstm_b_hh"])
    Bslab[1, :EMB] = np.asarray(p["qe_b"])
    Bslab[1, EMB:EMB + HIDDEN] = np.asarray(p["qn_b"])
    Bslab[2, :HIDDEN] = np.asarray(p["ep_b"])
    Bslab[3, :3 * HIDDEN] = np.asarray(p["mid_b"])
    Bslab[4, :NUM_ANSWER] = np.asarray(p["pre_b"])
    return jnp.asarray(W), jnp.asarray(Bslab)


# --------------------------------------------------------------------------
# Main
# --------------------------------------------------------------------------
if __name__ == "__main__":
    root = jax.random.PRNGKey(0)
    ks = jax.random.split(root, 24)

    emb_table = jax.random.normal(ks[0], (VOCAB, EMB), jnp.float32) * 0.1
    # TODO(synk): the original LanguageEncoder is external; approximated with a
    # single-layer masked LSTM (hidden state frozen after the mask ends).
    raw = {
        "lstm_w_ih": uniform_init(ks[1], (EMB, 4 * HID_LSTM), EMB),
        "lstm_w_hh": uniform_init(ks[2], (HID_LSTM, 4 * HID_LSTM), HID_LSTM),
        "lstm_b_ih": uniform_init(ks[3], (4 * HID_LSTM,), HID_LSTM),
        "lstm_b_hh": uniform_init(ks[19], (4 * HID_LSTM,), HID_LSTM),
        "gat_wn": uniform_init(ks[4], (EMB, HIDDEN), EMB),
        "gat_wr": uniform_init(ks[5], (EMB, HIDDEN), EMB),
        "a_src": uniform_init(ks[6], (NUM_HEADS, HEAD_DIM), HEAD_DIM),
        "a_dst": uniform_init(ks[7], (NUM_HEADS, HEAD_DIM), HEAD_DIM),
        "a_edge": uniform_init(ks[8], (NUM_HEADS, HEAD_DIM), HEAD_DIM),
        "qn_w": uniform_init(ks[9], (HID_LSTM, HIDDEN), HID_LSTM),
        "qn_b": uniform_init(ks[10], (HIDDEN,), HID_LSTM),
        "qe_w": uniform_init(ks[11], (HID_LSTM, EMB), HID_LSTM),
        "qe_b": uniform_init(ks[12], (EMB,), HID_LSTM),
        "ep_w": uniform_init(ks[13], (EMB, HIDDEN), EMB),
        "ep_b": uniform_init(ks[14], (HIDDEN,), EMB),
        "mid_w": uniform_init(ks[15], (2 * HIDDEN, 3 * HIDDEN), 2 * HIDDEN),
        "mid_b": uniform_init(ks[16], (3 * HIDDEN,), 2 * HIDDEN),
        "pre_w": uniform_init(ks[17], (3 * HIDDEN, NUM_ANSWER), 3 * HIDDEN),
        "pre_b": uniform_init(ks[18], (NUM_ANSWER,), 3 * HIDDEN),
    }
    w_slab, b_slab = pack_param_slabs(raw)

    dks = jax.random.split(jax.random.PRNGKey(1), 16)
    lens = jnp.array([SEQ, SEQ - 2], jnp.int32)
    mask = (jnp.arange(SEQ)[None, :] < lens[:, None]).astype(jnp.int32)
    item = {
        "question": jax.random.randint(dks[0], (BATCH, SEQ), 1, VOCAB, jnp.int32),
        "question_mask": mask,
        "img_nodes_feature": jax.random.randint(
            dks[1], (BATCH, N_IMG_NODES, MAX_WORDS), 1, VOCAB, jnp.int32),
        "img_edges_feature": jax.random.randint(
            dks[2], (BATCH, N_IMG_EDGES, MAX_WORDS), 1, VOCAB, jnp.int32),
        "img_node1_ids_list": jax.random.randint(
            dks[3], (BATCH, N_IMG_EDGES), 0, N_IMG_NODES, jnp.int32),
        "img_node2_ids_list": jax.random.randint(
            dks[4], (BATCH, N_IMG_EDGES), 0, N_IMG_NODES, jnp.int32),
        "kg_entity_tensor": jax.random.randint(
            dks[5], (BATCH, N_KG_NODES, MAX_WORDS), 1, VOCAB, jnp.int32),
        "kg_edge_tensor": jax.random.randint(
            dks[6], (BATCH, N_KG_EDGES, MAX_WORDS), 1, VOCAB, jnp.int32),
        "kg_node1_ids_list": jax.random.randint(
            dks[7], (BATCH, N_KG_EDGES), 0, N_KG_NODES, jnp.int32),
        "kg_node2_ids_list": jax.random.randint(
            dks[8], (BATCH, N_KG_EDGES), 0, N_KG_NODES, jnp.int32),
    }

    pred = gat_merge_graph_forward(item, emb_table, w_slab, b_slab)
    jax.block_until_ready(pred)
    assert pred.shape == (BATCH, NUM_ANSWER)
    assert bool(jnp.all(jnp.isfinite(pred)))
    print("KERNEL_OK")
</pallas_src>

<mosaic_0001>
module attributes {stable_mosaic.version = 11 : i64} {
  func.func @_fused_forward_kernel(%arg0: memref<488x128xf32, #tpu.memory_space<vmem>>, %arg1: memref<8x128xf32, #tpu.memory_space<vmem>>, %arg2: memref<248x128xf32, #tpu.memory_space<vmem>>, %arg3: memref<8x128xf32, #tpu.memory_space<vmem>>) attributes {dimension_semantics = [], scalar_prefetch = 0 : i64, scratch_operands = 0 : i64, tpu.core_type = #tpu.core_type<tc>} {
    %c0 = arith.constant 0 : index
    %c0_0 = arith.constant 0 : index
    %0 = vector.load %arg2[%c0, %c0_0] : memref<248x128xf32, #tpu.memory_space<vmem>>, vector<64x32xf32>
    %c0_1 = arith.constant 0 : index
    %c0_2 = arith.constant 0 : index
    %1 = vector.load %arg0[%c0_1, %c0_2] : memref<488x128xf32, #tpu.memory_space<vmem>>, vector<32x128xf32>
    %cst = arith.constant dense<0.000000e+00> : vector<64x128xf32>
    %2 = tpu.matmul %0, %1, %cst {dimension_numbers = #tpu.dot_dimension_numbers<[1], [0], [0], [1], [0, 0, 1, 1], [], []>} : vector<64x32xf32>, vector<32x128xf32>, vector<64x128xf32> -> vector<64x128xf32>
    %c0_3 = arith.constant 0 : index
    %c0_4 = arith.constant 0 : index
    %3 = vector.load %arg1[%c0_3, %c0_4] : memref<8x128xf32, #tpu.memory_space<vmem>>, vector<1x128xf32>
    %4 = vector.broadcast %3 : vector<1x128xf32> to vector<64x128xf32>
    %5 = arith.addf %2, %4 : vector<64x128xf32>
    %c32 = arith.constant 32 : index
    %c0_5 = arith.constant 0 : index
    %6 = vector.load %arg0[%c32, %c0_5] : memref<488x128xf32, #tpu.memory_space<vmem>>, vector<32x128xf32>
    %cst_6 = arith.constant 0.000000e+00 : f32
    %7 = vector.broadcast %cst_6 : f32 to vector<8x32xf32>
    %cst_7 = arith.constant 0.000000e+00 : f32
    %8 = vector.broadcast %cst_7 : f32 to vector<8x32xf32>
    %9 = vector.extract_strided_slice %5 {offsets = [0, 0], sizes = [8, 128], strides = [1, 1]} : vector<64x128xf32> to vector<8x128xf32>
    %cst_8 = arith.constant dense<0.000000e+00> : vector<8x128xf32>
    %10 = tpu.matmul %7, %6, %cst_8 {dimension_numbers = #tpu.dot_dimension_numbers<[1], [0], [0], [1], [0, 0, 1, 1], [], []>} : vector<8x32xf32>, vector<32x128xf32>, vector<8x128xf32> -> vector<8x128xf32>
    %11 = arith.addf %9, %10 : vector<8x128xf32>
    %c64 = arith.constant 64 : index
    %c0_9 = arith.constant 0 : index
    %12 = vector.load %arg2[%c64, %c0_9] : memref<248x128xf32, #tpu.memory_space<vmem>>, vector<8x32xf32>
    %13 = arith.negf %11 : vector<8x128xf32>
    %14 = math.exp %13 : vector<8x128xf32>
    %cst_10 = arith.constant 1.000000e+00 : f32
    %15 = vector.broadcast %cst_10 : f32 to vector<8x128xf32>
    %16 = arith.addf %15, %14 : vector<8x128xf32>
    %17 = arith.divf %15, %16 : vector<8x128xf32>
    %18 = math.tanh %11 : vector<8x128xf32>
    %19 = vector.extract_strided_slice %17 {offsets = [0, 0], sizes = [8, 32], strides = [1, 1]} : vector<8x128xf32> to vector<8x32xf32>
    %20 = vector.extract_strided_slice %17 {offsets = [0, 32], sizes = [8, 32], strides = [1, 1]} : vector<8x128xf32> to vector<8x32xf32>
    %21 = vector.extract_strided_slice %18 {offsets = [0, 64], sizes = [8, 32], strides = [1, 1]} : vector<8x128xf32> to vector<8x32xf32>
    %22 = vector.extract_strided_slice %17 {offsets = [0, 96], sizes = [8, 32], strides = [1, 1]} : vector<8x128xf32> to vector<8x32xf32>
    %23 = arith.mulf %20, %8 : vector<8x32xf32>
    %24 = arith.mulf %19, %21 : vector<8x32xf32>
    %25 = arith.addf %23, %24 : vector<8x32xf32>
    %26 = math.tanh %25 : vector<8x32xf32>
    %27 = arith.mulf %22, %26 : vector<8x32xf32>
    %28 = arith.mulf %12, %27 : vector<8x32xf32>
    %cst_11 = arith.constant 1.000000e+00 : f32
    %29 = vector.broadcast %cst_11 : f32 to vector<8x32xf32>
    %30 = arith.subf %29, %12 : vector<8x32xf32>
    %31 = arith.mulf %30, %7 : vector<8x32xf32>
    %32 = arith.addf %28, %31 : vector<8x32xf32>
    %33 = arith.mulf %12, %25 : vector<8x32xf32>
    %cst_12 = arith.constant 1.000000e+00 : f32
    %34 = vector.broadcast %cst_12 : f32 to vector<8x32xf32>
    %35 = arith.subf %34, %12 : vector<8x32xf32>
    %36 = arith.mulf %35, %8 : vector<8x32xf32>
    %37 = arith.addf %33, %36 : vector<8x32xf32>
    %38 = vector.extract_strided_slice %5 {offsets = [8, 0], sizes = [8, 128], strides = [1, 1]} : vector<64x128xf32> to vector<8x128xf32>
    %cst_13 = arith.constant dense<0.000000e+00> : vector<8x128xf32>
    %39 = tpu.matmul %32, %6, %cst_13 {dimension_numbers = #tpu.dot_dimension_numbers<[1], [0], [0], [1], [0, 0, 1, 1], [], []>} : vector<8x32xf32>, vector<32x128xf32>, vector<8x128xf32> -> vector<8x128xf32>
    %40 = arith.addf %38, %39 : vector<8x128xf32>
    %c72 = arith.constant 72 : index
    %c0_14 = arith.constant 0 : index
    %41 = vector.load %arg2[%c72, %c0_14] : memref<248x128xf32, #tpu.memory_space<vmem>>, vector<8x32xf32>
    %42 = arith.negf %40 : vector<8x128xf32>
    %43 = math.exp %42 : vector<8x128xf32>
    %cst_15 = arith.constant 1.000000e+00 : f32
    %44 = vector.broadcast %cst_15 : f32 to vector<8x128xf32>
    %45 = arith.addf %44, %43 : vector<8x128xf32>
    %46 = arith.divf %44, %45 : vector<8x128xf32>
    %47 = math.tanh %40 : vector<8x128xf32>
    %48 = vector.extract_strided_slice %46 {offsets = [0, 0], sizes = [8, 32], strides = [1, 1]} : vector<8x128xf32> to vector<8x32xf32>
    %49 = vector.extract_strided_slice %46 {offsets = [0, 32], sizes = [8, 32], strides = [1, 1]} : vector<8x128xf32> to vector<8x32xf32>
    %50 = vector.extract_strided_slice %47 {offsets = [0, 64], sizes = [8, 32], strides = [1, 1]} : vector<8x128xf32> to vector<8x32xf32>
    %51 = vector.extract_strided_slice %46 {offsets = [0, 96], sizes = [8, 32], strides = [1, 1]} : vector<8x128xf32> to vector<8x32xf32>
    %52 = arith.mulf %49, %37 : vector<8x32xf32>
    %53 = arith.mulf %48, %50 : vector<8x32xf32>
    %54 = arith.addf %52, %53 : vector<8x32xf32>
    %55 = math.tanh %54 : vector<8x32xf32>
    %56 = arith.mulf %51, %55 : vector<8x32xf32>
    %57 = arith.mulf %41, %56 : vector<8x32xf32>
    %cst_16 = arith.constant 1.000000e+00 : f32
    %58 = vector.broadcast %cst_16 : f32 to vector<8x32xf32>
    %59 = arith.subf %58, %41 : vector<8x32xf32>
    %60 = arith.mulf %59, %32 : vector<8x32xf32>
    %61 = arith.addf %57, %60 : vector<8x32xf32>
    %62 = arith.mulf %41, %54 : vector<8x32xf32>
    %cst_17 = arith.constant 1.000000e+00 : f32
    %63 = vector.broadcast %cst_17 : f32 to vector<8x32xf32>
    %64 = arith.subf %63, %41 : vector<8x32xf32>
    %65 = arith.mulf %64, %37 : vector<8x32xf32>
    %66 = arith.addf %62, %65 : vector<8x32xf32>
    %67 = vector.extract_strided_slice %5 {offsets = [16, 0], sizes = [8, 128], strides = [1, 1]} : vector<64x128xf32> to vector<8x128xf32>
    %cst_18 = arith.constant dense<0.000000e+00> : vector<8x128xf32>
    %68 = tpu.matmul %61, %6, %cst_18 {dimension_numbers = #tpu.dot_dimension_numbers<[1], [0], [0], [1], [0, 0, 1, 1], [], []>} : vector<8x32xf32>, vector<32x128xf32>, vector<8x128xf32> -> vector<8x128xf32>
    %69 = arith.addf %67, %68 : vector<8x128xf32>
    %c80 = arith.constant 80 : index
    %c0_19 = arith.constant 0 : index
    %70 = vector.load %arg2[%c80, %c0_19] : memref<248x128xf32, #tpu.memory_space<vmem>>, vector<8x32xf32>
    %71 = arith.negf %69 : vector<8x128xf32>
    %72 = math.exp %71 : vector<8x128xf32>
    %cst_20 = arith.constant 1.000000e+00 : f32
    %73 = vector.broadcast %cst_20 : f32 to vector<8x128xf32>
    %74 = arith.addf %73, %72 : vector<8x128xf32>
    %75 = arith.divf %73, %74 : vector<8x128xf32>
    %76 = math.tanh %69 : vector<8x128xf32>
    %77 = vector.extract_strided_slice %75 {offsets = [0, 0], sizes = [8, 32], strides = [1, 1]} : vector<8x128xf32> to vector<8x32xf32>
    %78 = vector.extract_strided_slice %75 {offsets = [0, 32], sizes = [8, 32], strides = [1, 1]} : vector<8x128xf32> to vector<8x32xf32>
    %79 = vector.extract_strided_slice %76 {offsets = [0, 64], sizes = [8, 32], strides = [1, 1]} : vector<8x128xf32> to vector<8x32xf32>
    %80 = vector.extract_strided_slice %75 {offsets = [0, 96], sizes = [8, 32], strides = [1, 1]} : vector<8x128xf32> to vector<8x32xf32>
    %81 = arith.mulf %78, %66 : vector<8x32xf32>
    %82 = arith.mulf %77, %79 : vector<8x32xf32>
    %83 = arith.addf %81, %82 : vector<8x32xf32>
    %84 = math.tanh %83 : vector<8x32xf32>
    %85 = arith.mulf %80, %84 : vector<8x32xf32>
    %86 = arith.mulf %70, %85 : vector<8x32xf32>
    %cst_21 = arith.constant 1.000000e+00 : f32
    %87 = vector.broadcast %cst_21 : f32 to vector<8x32xf32>
    %88 = arith.subf %87, %70 : vector<8x32xf32>
    %89 = arith.mulf %88, %61 : vector<8x32xf32>
    %90 = arith.addf %86, %89 : vector<8x32xf32>
    %91 = arith.mulf %70, %83 : vector<8x32xf32>
    %cst_22 = arith.constant 1.000000e+00 : f32
    %92 = vector.broadcast %cst_22 : f32 to vector<8x32xf32>
    %93 = arith.subf %92, %70 : vector<8x32xf32>
    %94 = arith.mulf %93, %66 : vector<8x32xf32>
    %95 = arith.addf %91, %94 : vector<8x32xf32>
    %96 = vector.extract_strided_slice %5 {offsets = [24, 0], sizes = [8, 128], strides = [1, 1]} : vector<64x128xf32> to vector<8x128xf32>
    %cst_23 = arith.constant dense<0.000000e+00> : vector<8x128xf32>
    %97 = tpu.matmul %90, %6, %cst_23 {dimension_numbers = #tpu.dot_dimension_numbers<[1], [0], [0], [1], [0, 0, 1, 1], [], []>} : vector<8x32xf32>, vector<32x128xf32>, vector<8x128xf32> -> vector<8x128xf32>
    %98 = arith.addf %96, %97 : vector<8x128xf32>
    %c88 = arith.constant 88 : index
    %c0_24 = arith.constant 0 : index
    %99 = vector.load %arg2[%c88, %c0_24] : memref<248x128xf32, #tpu.memory_space<vmem>>, vector<8x32xf32>
    %100 = arith.negf %98 : vector<8x128xf32>
    %101 = math.exp %100 : vector<8x128xf32>
    %cst_25 = arith.constant 1.000000e+00 : f32
    %102 = vector.broadcast %cst_25 : f32 to vector<8x128xf32>
    %103 = arith.addf %102, %101 : vector<8x128xf32>
    %104 = arith.divf %102, %103 : vector<8x128xf32>
    %105 = math.tanh %98 : vector<8x128xf32>
    %106 = vector.extract_strided_slice %104 {offsets = [0, 0], sizes = [8, 32], strides = [1, 1]} : vector<8x128xf32> to vector<8x32xf32>
    %107 = vector.extract_strided_slice %104 {offsets = [0, 32], sizes = [8, 32], strides = [1, 1]} : vector<8x128xf32> to vector<8x32xf32>
    %108 = vector.extract_strided_slice %105 {offsets = [0, 64], sizes = [8, 32], strides = [1, 1]} : vector<8x128xf32> to vector<8x32xf32>
    %109 = vector.extract_strided_slice %104 {offsets = [0, 96], sizes = [8, 32], strides = [1, 1]} : vector<8x128xf32> to vector<8x32xf32>
    %110 = arith.mulf %107, %95 : vector<8x32xf32>
    %111 = arith.mulf %106, %108 : vector<8x32xf32>
    %112 = arith.addf %110, %111 : vector<8x32xf32>
    %113 = math.tanh %112 : vector<8x32xf32>
    %114 = arith.mulf %109, %113 : vector<8x32xf32>
    %115 = arith.mulf %99, %114 : vector<8x32xf32>
    %cst_26 = arith.constant 1.000000e+00 : f32
    %116 = vector.broadcast %cst_26 : f32 to vector<8x32xf32>
    %117 = arith.subf %116, %99 : vector<8x32xf32>
    %118 = arith.mulf %117, %90 : vector<8x32xf32>
    %119 = arith.addf %115, %118 : vector<8x32xf32>
    %120 = arith.mulf %99, %112 : vector<8x32xf32>
    %cst_27 = arith.constant 1.000000e+00 : f32
    %121 = vector.broadcast %cst_27 : f32 to vector<8x32xf32>
    %122 = arith.subf %121, %99 : vector<8x32xf32>
    %123 = arith.mulf %122, %95 : vector<8x32xf32>
    %124 = arith.addf %120, %123 : vector<8x32xf32>
    %125 = vector.extract_strided_slice %5 {offsets = [32, 0], sizes = [8, 128], strides = [1, 1]} : vector<64x128xf32> to vector<8x128xf32>
    %cst_28 = arith.constant dense<0.000000e+00> : vector<8x128xf32>
    %126 = tpu.matmul %119, %6, %cst_28 {dimension_numbers = #tpu.dot_dimension_numbers<[1], [0], [0], [1], [0, 0, 1, 1], [], []>} : vector<8x32xf32>, vector<32x128xf32>, vector<8x128xf32> -> vector<8x128xf32>
    %127 = arith.addf %125, %126 : vector<8x128xf32>
    %c96 = arith.constant 96 : index
    %c0_29 = arith.constant 0 : index
    %128 = vector.load %arg2[%c96, %c0_29] : memref<248x128xf32, #tpu.memory_space<vmem>>, vector<8x32xf32>
    %129 = arith.negf %127 : vector<8x128xf32>
    %130 = math.exp %129 : vector<8x128xf32>
    %cst_30 = arith.constant 1.000000e+00 : f32
    %131 = vector.broadcast %cst_30 : f32 to vector<8x128xf32>
    %132 = arith.addf %131, %130 : vector<8x128xf32>
    %133 = arith.divf %131, %132 : vector<8x128xf32>
    %134 = math.tanh %127 : vector<8x128xf32>
    %135 = vector.extract_strided_slice %133 {offsets = [0, 0], sizes = [8, 32], strides = [1, 1]} : vector<8x128xf32> to vector<8x32xf32>
    %136 = vector.extract_strided_slice %133 {offsets = [0, 32], sizes = [8, 32], strides = [1, 1]} : vector<8x128xf32> to vector<8x32xf32>
    %137 = vector.extract_strided_slice %134 {offsets = [0, 64], sizes = [8, 32], strides = [1, 1]} : vector<8x128xf32> to vector<8x32xf32>
    %138 = vector.extract_strided_slice %133 {offsets = [0, 96], sizes = [8, 32], strides = [1, 1]} : vector<8x128xf32> to vector<8x32xf32>
    %139 = arith.mulf %136, %124 : vector<8x32xf32>
    %140 = arith.mulf %135, %137 : vector<8x32xf32>
    %141 = arith.addf %139, %140 : vector<8x32xf32>
    %142 = math.tanh %141 : vector<8x32xf32>
    %143 = arith.mulf %138, %142 : vector<8x32xf32>
    %144 = arith.mulf %128, %143 : vector<8x32xf32>
    %cst_31 = arith.constant 1.000000e+00 : f32
    %145 = vector.broadcast %cst_31 : f32 to vector<8x32xf32>
    %146 = arith.subf %145, %128 : vector<8x32xf32>
    %147 = arith.mulf %146, %119 : vector<8x32xf32>
    %148 = arith.addf %144, %147 : vector<8x32xf32>
    %149 = arith.mulf %128, %141 : vector<8x32xf32>
    %cst_32 = arith.constant 1.000000e+00 : f32
    %150 = vector.broadcast %cst_32 : f32 to vector<8x32xf32>
    %151 = arith.subf %150, %128 : vector<8x32xf32>
    %152 = arith.mulf %151, %124 : vector<8x32xf32>
    %153 = arith.addf %149, %152 : vector<8x32xf32>
    %154 = vector.extract_strided_slice %5 {offsets = [40, 0], sizes = [8, 128], strides = [1, 1]} : vector<64x128xf32> to vector<8x128xf32>
    %cst_33 = arith.constant dense<0.000000e+00> : vector<8x128xf32>
    %155 = tpu.matmul %148, %6, %cst_33 {dimension_numbers = #tpu.dot_dimension_numbers<[1], [0], [0], [1], [0, 0, 1, 1], [], []>} : vector<8x32xf32>, vector<32x128xf32>, vector<8x128xf32> -> vector<8x128xf32>
    %156 = arith.addf %154, %155 : vector<8x128xf32>
    %c104 = arith.constant 104 : index
    %c0_34 = arith.constant 0 : index
    %157 = vector.load %arg2[%c104, %c0_34] : memref<248x128xf32, #tpu.memory_space<vmem>>, vector<8x32xf32>
    %158 = arith.negf %156 : vector<8x128xf32>
    %159 = math.exp %158 : vector<8x128xf32>
    %cst_35 = arith.constant 1.000000e+00 : f32
    %160 = vector.broadcast %cst_35 : f32 to vector<8x128xf32>
    %161 = arith.addf %160, %159 : vector<8x128xf32>
    %162 = arith.divf %160, %161 : vector<8x128xf32>
    %163 = math.tanh %156 : vector<8x128xf32>
    %164 = vector.extract_strided_slice %162 {offsets = [0, 0], sizes = [8, 32], strides = [1, 1]} : vector<8x128xf32> to vector<8x32xf32>
    %165 = vector.extract_strided_slice %162 {offsets = [0, 32], sizes = [8, 32], strides = [1, 1]} : vector<8x128xf32> to vector<8x32xf32>
    %166 = vector.extract_strided_slice %163 {offsets = [0, 64], sizes = [8, 32], strides = [1, 1]} : vector<8x128xf32> to vector<8x32xf32>
    %167 = vector.extract_strided_slice %162 {offsets = [0, 96], sizes = [8, 32], strides = [1, 1]} : vector<8x128xf32> to vector<8x32xf32>
    %168 = arith.mulf %165, %153 : vector<8x32xf32>
    %169 = arith.mulf %164, %166 : vector<8x32xf32>
    %170 = arith.addf %168, %169 : vector<8x32xf32>
    %171 = math.tanh %170 : vector<8x32xf32>
    %172 = arith.mulf %167, %171 : vector<8x32xf32>
    %173 = arith.mulf %157, %172 : vector<8x32xf32>
    %cst_36 = arith.constant 1.000000e+00 : f32
    %174 = vector.broadcast %cst_36 : f32 to vector<8x32xf32>
    %175 = arith.subf %174, %157 : vector<8x32xf32>
    %176 = arith.mulf %175, %148 : vector<8x32xf32>
    %177 = arith.addf %173, %176 : vector<8x32xf32>
    %178 = arith.mulf %157, %170 : vector<8x32xf32>
    %cst_37 = arith.constant 1.000000e+00 : f32
    %179 = vector.broadcast %cst_37 : f32 to vector<8x32xf32>
    %180 = arith.subf %179, %157 : vector<8x32xf32>
    %181 = arith.mulf %180, %153 : vector<8x32xf32>
    %182 = arith.addf %178, %181 : vector<8x32xf32>
    %183 = vector.extract_strided_slice %5 {offsets = [48, 0], sizes = [8, 128], strides = [1, 1]} : vector<64x128xf32> to vector<8x128xf32>
    %cst_38 = arith.constant dense<0.000000e+00> : vector<8x128xf32>
    %184 = tpu.matmul %177, %6, %cst_38 {dimension_numbers = #tpu.dot_dimension_numbers<[1], [0], [0], [1], [0, 0, 1, 1], [], []>} : vector<8x32xf32>, vector<32x128xf32>, vector<8x128xf32> -> vector<8x128xf32>
    %185 = arith.addf %183, %184 : vector<8x128xf32>
    %c112 = arith.constant 112 : index
    %c0_39 = arith.constant 0 : index
    %186 = vector.load %arg2[%c112, %c0_39] : memref<248x128xf32, #tpu.memory_space<vmem>>, vector<8x32xf32>
    %187 = arith.negf %185 : vector<8x128xf32>
    %188 = math.exp %187 : vector<8x128xf32>
    %cst_40 = arith.constant 1.000000e+00 : f32
    %189 = vector.broadcast %cst_40 : f32 to vector<8x128xf32>
    %190 = arith.addf %189, %188 : vector<8x128xf32>
    %191 = arith.divf %189, %190 : vector<8x128xf32>
    %192 = math.tanh %185 : vector<8x128xf32>
    %193 = vector.extract_strided_slice %191 {offsets = [0, 0], sizes = [8, 32], strides = [1, 1]} : vector<8x128xf32> to vector<8x32xf32>
    %194 = vector.extract_strided_slice %191 {offsets = [0, 32], sizes = [8, 32], strides = [1, 1]} : vector<8x128xf32> to vector<8x32xf32>
    %195 = vector.extract_strided_slice %192 {offsets = [0, 64], sizes = [8, 32], strides = [1, 1]} : vector<8x128xf32> to vector<8x32xf32>
    %196 = vector.extract_strided_slice %191 {offsets = [0, 96], sizes = [8, 32], strides = [1, 1]} : vector<8x128xf32> to vector<8x32xf32>
    %197 = arith.mulf %194, %182 : vector<8x32xf32>
    %198 = arith.mulf %193, %195 : vector<8x32xf32>
    %199 = arith.addf %197, %198 : vector<8x32xf32>
    %200 = math.tanh %199 : vector<8x32xf32>
    %201 = arith.mulf %196, %200 : vector<8x32xf32>
    %202 = arith.mulf %186, %201 : vector<8x32xf32>
    %cst_41 = arith.constant 1.000000e+00 : f32
    %203 = vector.broadcast %cst_41 : f32 to vector<8x32xf32>
    %204 = arith.subf %203, %186 : vector<8x32xf32>
    %205 = arith.mulf %204, %177 : vector<8x32xf32>
    %206 = arith.addf %202, %205 : vector<8x32xf32>
    %207 = arith.mulf %186, %199 : vector<8x32xf32>
    %cst_42 = arith.constant 1.000000e+00 : f32
    %208 = vector.broadcast %cst_42 : f32 to vector<8x32xf32>
    %209 = arith.subf %208, %186 : vector<8x32xf32>
    %210 = arith.mulf %209, %182 : vector<8x32xf32>
    %211 = arith.addf %207, %210 : vector<8x32xf32>
    %212 = vector.extract_strided_slice %5 {offsets = [56, 0], sizes = [8, 128], strides = [1, 1]} : vector<64x128xf32> to vector<8x128xf32>
    %cst_43 = arith.constant dense<0.000000e+00> : vector<8x128xf32>
    %213 = tpu.matmul %206, %6, %cst_43 {dimension_numbers = #tpu.dot_dimension_numbers<[1], [0], [0], [1], [0, 0, 1, 1], [], []>} : vector<8x32xf32>, vector<32x128xf32>, vector<8x128xf32> -> vector<8x128xf32>
    %214 = arith.addf %212, %213 : vector<8x128xf32>
    %c120 = arith.constant 120 : index
    %c0_44 = arith.constant 0 : index
    %215 = vector.load %arg2[%c120, %c0_44] : memref<248x128xf32, #tpu.memory_space<vmem>>, vector<8x32xf32>
    %216 = arith.negf %214 : vector<8x128xf32>
    %217 = math.exp %216 : vector<8x128xf32>
    %cst_45 = arith.constant 1.000000e+00 : f32
    %218 = vector.broadcast %cst_45 : f32 to vector<8x128xf32>
    %219 = arith.addf %218, %217 : vector<8x128xf32>
    %220 = arith.divf %218, %219 : vector<8x128xf32>
    %221 = math.tanh %214 : vector<8x128xf32>
    %222 = vector.extract_strided_slice %220 {offsets = [0, 0], sizes = [8, 32], strides = [1, 1]} : vector<8x128xf32> to vector<8x32xf32>
    %223 = vector.extract_strided_slice %220 {offsets = [0, 32], sizes = [8, 32], strides = [1, 1]} : vector<8x128xf32> to vector<8x32xf32>
    %224 = vector.extract_strided_slice %221 {offsets = [0, 64], sizes = [8, 32], strides = [1, 1]} : vector<8x128xf32> to vector<8x32xf32>
    %225 = vector.extract_strided_slice %220 {offsets = [0, 96], sizes = [8, 32], strides = [1, 1]} : vector<8x128xf32> to vector<8x32xf32>
    %226 = arith.mulf %223, %211 : vector<8x32xf32>
    %227 = arith.mulf %222, %224 : vector<8x32xf32>
    %228 = arith.addf %226, %227 : vector<8x32xf32>
    %229 = math.tanh %228 : vector<8x32xf32>
    %230 = arith.mulf %225, %229 : vector<8x32xf32>
    %231 = arith.mulf %215, %230 : vector<8x32xf32>
    %cst_46 = arith.constant 1.000000e+00 : f32
    %232 = vector.broadcast %cst_46 : f32 to vector<8x32xf32>
    %233 = arith.subf %232, %215 : vector<8x32xf32>
    %234 = arith.mulf %233, %206 : vector<8x32xf32>
    %235 = arith.addf %231, %234 : vector<8x32xf32>
    %c128 = arith.constant 128 : index
    %c0_47 = arith.constant 0 : index
    %236 = vector.load %arg2[%c128, %c0_47] : memref<248x128xf32, #tpu.memory_space<vmem>>, vector<48x64xf32>
    %c64_48 = arith.constant 64 : index
    %c0_49 = arith.constant 0 : index
    %237 = vector.load %arg0[%c64_48, %c0_49] : memref<488x128xf32, #tpu.memory_space<vmem>>, vector<64x32xf32>
    %cst_50 = arith.constant dense<0.000000e+00> : vector<48x32xf32>
    %238 = tpu.matmul %236, %237, %cst_50 {dimension_numbers = #tpu.dot_dimension_numbers<[1], [0], [0], [1], [0, 0, 1, 1], [], []>} : vector<48x64xf32>, vector<64x32xf32>, vector<48x32xf32> -> vector<48x32xf32>
    %239 = vector.extract_strided_slice %238 {offsets = [0, 0], sizes = [24, 32], strides = [1, 1]} : vector<48x32xf32> to vector<24x32xf32>
    %240 = vector.extract_strided_slice %238 {offsets = [24, 0], sizes = [24, 32], strides = [1, 1]} : vector<48x32xf32> to vector<24x32xf32>
    %c176 = arith.constant 176 : index
    %c0_51 = arith.constant 0 : index
    %241 = vector.load %arg2[%c176, %c0_51] : memref<248x128xf32, #tpu.memory_space<vmem>>, vector<48x24xf32>
    %242 = arith.fptosi %241 : vector<48x24xf32> to vector<48x24xi32>
    %243 = tpu.iota {dimensions = array<i32: 1>} : vector<48x24xi32>
    %244 = arith.cmpi eq, %243, %242 : vector<48x24xi32>
    %245 = arith.extui %244 : vector<48x24xi1> to vector<48x24xi32>
    %246 = arith.sitofp %245 : vector<48x24xi32> to vector<48x24xf32>
    %247 = vector.extract_strided_slice %246 {offsets = [24, 0], sizes = [24, 24], strides = [1, 1]} : vector<48x24xf32> to vector<24x24xf32>
    %c224 = arith.constant 224 : index
    %c0_52 = arith.constant 0 : index
    %248 = vector.load %arg2[%c224, %c0_52] : memref<248x128xf32, #tpu.memory_space<vmem>>, vector<24x24xf32>
    %249 = arith.fptosi %248 : vector<24x24xf32> to vector<24x24xi32>
    %250 = tpu.iota {dimensions = array<i32: 0>} : vector<24x24xi32>
    %251 = arith.cmpi eq, %250, %249 : vector<24x24xi32>
    %252 = arith.extui %251 : vector<24x24xi1> to vector<24x24xi32>
    %253 = arith.sitofp %252 : vector<24x24xi32> to vector<24x24xf32>
    %cst_53 = arith.constant dense<0.000000e+00> : vector<48x32xf32>
    %254 = tpu.matmul %246, %239, %cst_53 {dimension_numbers = #tpu.dot_dimension_numbers<[1], [0], [0], [1], [0, 0, 1, 1], [], []>} : vector<48x24xf32>, vector<24x32xf32>, vector<48x32xf32> -> vector<48x32xf32>
    %255 = vector.extract_strided_slice %254 {offsets = [0, 0], sizes = [24, 32], strides = [1, 1]} : vector<48x32xf32> to vector<24x32xf32>
    %256 = vector.extract_strided_slice %254 {offsets = [24, 0], sizes = [24, 32], strides = [1, 1]} : vector<48x32xf32> to vector<24x32xf32>
    %c128_54 = arith.constant 128 : index
    %c0_55 = arith.constant 0 : index
    %257 = vector.load %arg0[%c128_54, %c0_55] : memref<488x128xf32, #tpu.memory_space<vmem>>, vector<32x8xf32>
    %cst_56 = arith.constant dense<0.000000e+00> : vector<24x8xf32>
    %258 = tpu.matmul %255, %257, %cst_56 {dimension_numbers = #tpu.dot_dimension_numbers<[1], [0], [0], [1], [0, 0, 1, 1], [], []>} : vector<24x32xf32>, vector<32x8xf32>, vector<24x8xf32> -> vector<24x8xf32>
    %c160 = arith.constant 160 : index
    %c0_57 = arith.constant 0 : index
    %259 = vector.load %arg0[%c160, %c0_57] : memref<488x128xf32, #tpu.memory_space<vmem>>, vector<32x8xf32>
    %cst_58 = arith.constant dense<0.000000e+00> : vector<24x8xf32>
    %260 = tpu.matmul %256, %259, %cst_58 {dimension_numbers = #tpu.dot_dimension_numbers<[1], [0], [0], [1], [0, 0, 1, 1], [], []>} : vector<24x32xf32>, vector<32x8xf32>, vector<24x8xf32> -> vector<24x8xf32>
    %261 = arith.addf %258, %260 : vector<24x8xf32>
    %c192 = arith.constant 192 : index
    %c0_59 = arith.constant 0 : index
    %262 = vector.load %arg0[%c192, %c0_59] : memref<488x128xf32, #tpu.memory_space<vmem>>, vector<32x8xf32>
    %cst_60 = arith.constant dense<0.000000e+00> : vector<24x8xf32>
    %263 = tpu.matmul %240, %262, %cst_60 {dimension_numbers = #tpu.dot_dimension_numbers<[1], [0], [0], [1], [0, 0, 1, 1], [], []>} : vector<24x32xf32>, vector<32x8xf32>, vector<24x8xf32> -> vector<24x8xf32>
    %264 = arith.addf %261, %263 : vector<24x8xf32>
    %cst_61 = arith.constant 0.000000e+00 : f32
    %265 = vector.broadcast %cst_61 : f32 to vector<24x8xf32>
    %266 = arith.cmpf ogt, %264, %265 : vector<24x8xf32>
    %cst_62 = arith.constant 2.000000e-01 : f32
    %267 = vector.broadcast %cst_62 : f32 to vector<24x8xf32>
    %268 = arith.mulf %267, %264 : vector<24x8xf32>
    %269 = arith.select %266, %264, %268 : vector<24x8xi1>, vector<24x8xf32>
    %270 = math.exp %269 : vector<24x8xf32>
    %cst_63 = arith.constant dense<0.000000e+00> : vector<24x8xf32>
    %271 = tpu.matmul %253, %270, %cst_63 {dimension_numbers = #tpu.dot_dimension_numbers<[1], [0], [0], [1], [0, 0, 1, 1], [], []>} : vector<24x24xf32>, vector<24x8xf32>, vector<24x8xf32> -> vector<24x8xf32>
    %cst_64 = arith.constant dense<0.000000e+00> : vector<24x8xf32>
    %272 = tpu.matmul %247, %271, %cst_64 {dimension_numbers = #tpu.dot_dimension_numbers<[1], [0], [0], [1], [0, 0, 1, 1], [], []>} : vector<24x24xf32>, vector<24x8xf32>, vector<24x8xf32> -> vector<24x8xf32>
    %273 = arith.divf %270, %272 : vector<24x8xf32>
    %c224_65 = arith.constant 224 : index
    %c0_66 = arith.constant 0 : index
    %274 = vector.load %arg0[%c224_65, %c0_66] : memref<488x128xf32, #tpu.memory_space<vmem>>, vector<8x32xf32>
    %cst_67 = arith.constant dense<0.000000e+00> : vector<24x32xf32>
    %275 = tpu.matmul %273, %274, %cst_67 {dimension_numbers = #tpu.dot_dimension_numbers<[1], [0], [0], [1], [0, 0, 1, 1], [], []>} : vector<24x8xf32>, vector<8x32xf32>, vector<24x32xf32> -> vector<24x32xf32>
    %276 = arith.mulf %275, %255 : vector<24x32xf32>
    %cst_68 = arith.constant dense<0.000000e+00> : vector<24x32xf32>
    %277 = tpu.matmul %253, %276, %cst_68 {dimension_numbers = #tpu.dot_dimension_numbers<[1], [0], [0], [1], [0, 0, 1, 1], [], []>} : vector<24x24xf32>, vector<24x32xf32>, vector<24x32xf32> -> vector<24x32xf32>
    %cst_69 = arith.constant 0.000000e+00 : f32
    %278 = vector.broadcast %cst_69 : f32 to vector<24x32xf32>
    %279 = arith.cmpf ogt, %277, %278 : vector<24x32xf32>
    %cst_70 = arith.constant 0.000000e+00 : f32
    %280 = vector.broadcast %cst_70 : f32 to vector<24x32xf32>
    %281 = arith.minimumf %277, %280 : vector<24x32xf32>
    %282 = math.exp %281 : vector<24x32xf32>
    %cst_71 = arith.constant 1.000000e+00 : f32
    %283 = vector.broadcast %cst_71 : f32 to vector<24x32xf32>
    %284 = arith.subf %282, %283 : vector<24x32xf32>
    %285 = arith.select %279, %277, %284 : vector<24x32xi1>, vector<24x32xf32>
    %286 = tpu.iota {dimensions = array<i32: 0>} : vector<8x24xi32>
    %287 = tpu.iota {dimensions = array<i32: 1>} : vector<8x24xi32>
    %c10_i32 = arith.constant 10 : i32
    %288 = vector.broadcast %c10_i32 : i32 to vector<8x24xi32>
    %289 = arith.muli %286, %288 : vector<8x24xi32>
    %290 = arith.cmpi sge, %287, %289 : vector<8x24xi32>
    %c1_i32 = arith.constant 1 : i32
    %291 = vector.broadcast %c1_i32 : i32 to vector<8x24xi32>
    %292 = arith.addi %286, %291 : vector<8x24xi32>
    %c10_i32_72 = arith.constant 10 : i32
    %293 = vector.broadcast %c10_i32_72 : i32 to vector<8x24xi32>
    %294 = arith.muli %292, %293 : vector<8x24xi32>
    %295 = arith.cmpi slt, %287, %294 : vector<8x24xi32>
    %296 = arith.andi %290, %295 : vector<8x24xi1>
    %c2_i32 = arith.constant 2 : i32
    %297 = vector.broadcast %c2_i32 : i32 to vector<8x24xi32>
    %298 = arith.cmpi slt, %286, %297 : vector<8x24xi32>
    %299 = arith.andi %296, %298 : vector<8x24xi1>
    %300 = arith.extui %299 : vector<8x24xi1> to vector<8x24xi32>
    %301 = arith.sitofp %300 : vector<8x24xi32> to vector<8x24xf32>
    %c12_i32 = arith.constant 12 : i32
    %302 = vector.broadcast %c12_i32 : i32 to vector<8x24xi32>
    %303 = arith.muli %286, %302 : vector<8x24xi32>
    %304 = arith.cmpi sge, %287, %303 : vector<8x24xi32>
    %c1_i32_73 = arith.constant 1 : i32
    %305 = vector.broadcast %c1_i32_73 : i32 to vector<8x24xi32>
    %306 = arith.addi %286, %305 : vector<8x24xi32>
    %c12_i32_74 = arith.constant 12 : i32
    %307 = vector.broadcast %c12_i32_74 : i32 to vector<8x24xi32>
    %308 = arith.muli %306, %307 : vector<8x24xi32>
    %309 = arith.cmpi slt, %287, %308 : vector<8x24xi32>
    %310 = arith.andi %304, %309 : vector<8x24xi1>
    %c2_i32_75 = arith.constant 2 : i32
    %311 = vector.broadcast %c2_i32_75 : i32 to vector<8x24xi32>
    %312 = arith.cmpi slt, %286, %311 : vector<8x24xi32>
    %313 = arith.andi %310, %312 : vector<8x24xi1>
    %314 = arith.extui %313 : vector<8x24xi1> to vector<8x24xi32>
    %315 = arith.sitofp %314 : vector<8x24xi32> to vector<8x24xf32>
    %cst_76 = arith.constant dense<0.000000e+00> : vector<8x32xf32>
    %316 = tpu.matmul %301, %285, %cst_76 {dimension_numbers = #tpu.dot_dimension_numbers<[1], [0], [0], [1], [0, 0, 1, 1], [], []>} : vector<8x24xf32>, vector<24x32xf32>, vector<8x32xf32> -> vector<8x32xf32>
    %cst_77 = arith.constant dense<0.000000e+00> : vector<8x32xf32>
    %317 = tpu.matmul %315, %240, %cst_77 {dimension_numbers = #tpu.dot_dimension_numbers<[1], [0], [0], [1], [0, 0, 1, 1], [], []>} : vector<8x24xf32>, vector<24x32xf32>, vector<8x32xf32> -> vector<8x32xf32>
    %c232 = arith.constant 232 : index
    %c0_78 = arith.constant 0 : index
    %318 = vector.load %arg0[%c232, %c0_78] : memref<488x128xf32, #tpu.memory_space<vmem>>, vector<32x64xf32>
    %cst_79 = arith.constant dense<0.000000e+00> : vector<8x64xf32>
    %319 = tpu.matmul %235, %318, %cst_79 {dimension_numbers = #tpu.dot_dimension_numbers<[1], [0], [0], [1], [0, 0, 1, 1], [], []>} : vector<8x32xf32>, vector<32x64xf32>, vector<8x64xf32> -> vector<8x64xf32>
    %c1 = arith.constant 1 : index
    %c0_80 = arith.constant 0 : index
    %320 = vector.load %arg1[%c1, %c0_80] : memref<8x128xf32, #tpu.memory_space<vmem>>, vector<1x64xf32>
    %321 = vector.broadcast %320 : vector<1x64xf32> to vector<8x64xf32>
    %322 = arith.addf %319, %321 : vector<8x64xf32>
    %323 = vector.extract_strided_slice %322 {offsets = [0, 0], sizes = [8, 32], strides = [1, 1]} : vector<8x64xf32> to vector<8x32xf32>
    %324 = arith.addf %323, %317 : vector<8x32xf32>
    %325 = vector.extract_strided_slice %322 {offsets = [0, 32], sizes = [8, 32], strides = [1, 1]} : vector<8x64xf32> to vector<8x32xf32>
    %326 = arith.addf %325, %316 : vector<8x32xf32>
    %c264 = arith.constant 264 : index
    %c0_81 = arith.constant 0 : index
    %327 = vector.load %arg0[%c264, %c0_81] : memref<488x128xf32, #tpu.memory_space<vmem>>, vector<32x32xf32>
    %cst_82 = arith.constant dense<0.000000e+00> : vector<8x32xf32>
    %328 = tpu.matmul %324, %327, %cst_82 {dimension_numbers = #tpu.dot_dimension_numbers<[1], [0], [0], [1], [0, 0, 1, 1], [], []>} : vector<8x32xf32>, vector<32x32xf32>, vector<8x32xf32> -> vector<8x32xf32>
    %c2 = arith.constant 2 : index
    %c0_83 = arith.constant 0 : index
    %329 = vector.load %arg1[%c2, %c0_83] : memref<8x128xf32, #tpu.memory_space<vmem>>, vector<1x32xf32>
    %330 = vector.broadcast %329 : vector<1x32xf32> to vector<8x32xf32>
    %331 = arith.addf %328, %330 : vector<8x32xf32>
    %c296 = arith.constant 296 : index
    %c0_84 = arith.constant 0 : index
    %332 = vector.load %arg0[%c296, %c0_84] : memref<488x128xf32, #tpu.memory_space<vmem>>, vector<32x128xf32>
    %cst_85 = arith.constant dense<0.000000e+00> : vector<8x128xf32>
    %333 = tpu.matmul %331, %332, %cst_85 {dimension_numbers = #tpu.dot_dimension_numbers<[1], [0], [0], [1], [0, 0, 1, 1], [], []>} : vector<8x32xf32>, vector<32x128xf32>, vector<8x128xf32> -> vector<8x128xf32>
    %c328 = arith.constant 328 : index
    %c0_86 = arith.constant 0 : index
    %334 = vector.load %arg0[%c328, %c0_86] : memref<488x128xf32, #tpu.memory_space<vmem>>, vector<32x128xf32>
    %cst_87 = arith.constant dense<0.000000e+00> : vector<8x128xf32>
    %335 = tpu.matmul %326, %334, %cst_87 {dimension_numbers = #tpu.dot_dimension_numbers<[1], [0], [0], [1], [0, 0, 1, 1], [], []>} : vector<8x32xf32>, vector<32x128xf32>, vector<8x128xf32> -> vector<8x128xf32>
    %336 = arith.addf %333, %335 : vector<8x128xf32>
    %c3 = arith.constant 3 : index
    %c0_88 = arith.constant 0 : index
    %337 = vector.load %arg1[%c3, %c0_88] : memref<8x128xf32, #tpu.memory_space<vmem>>, vector<1x128xf32>
    %338 = vector.broadcast %337 : vector<1x128xf32> to vector<8x128xf32>
    %339 = arith.addf %336, %338 : vector<8x128xf32>
    %c360 = arith.constant 360 : index
    %c0_89 = arith.constant 0 : index
    %340 = vector.load %arg0[%c360, %c0_89] : memref<488x128xf32, #tpu.memory_space<vmem>>, vector<128x128xf32>
    %cst_90 = arith.constant dense<0.000000e+00> : vector<8x128xf32>
    %341 = tpu.matmul %339, %340, %cst_90 {dimension_numbers = #tpu.dot_dimension_numbers<[1], [0], [0], [1], [0, 0, 1, 1], [], []>} : vector<8x128xf32>, vector<128x128xf32>, vector<8x128xf32> -> vector<8x128xf32>
    %c4 = arith.constant 4 : index
    %c0_91 = arith.constant 0 : index
    %342 = vector.load %arg1[%c4, %c0_91] : memref<8x128xf32, #tpu.memory_space<vmem>>, vector<1x128xf32>
    %343 = vector.broadcast %342 : vector<1x128xf32> to vector<8x128xf32>
    %344 = arith.addf %341, %343 : vector<8x128xf32>
    %c0_92 = arith.constant 0 : index
    %c0_93 = arith.constant 0 : index
    %345 = vector.load %arg3[%c0_92, %c0_93] : memref<8x128xf32, #tpu.memory_space<vmem>>, vector<8x128xf32>
    tpu.vector_store %arg3[%c0_92, %c0_93], %344 {strides = array<i32>} : memref<8x128xf32, #tpu.memory_space<vmem>>, vector<8x128xf32>,
    return
  }
}

</mosaic_0001>

<bundles_post_ra>
// kernel: gat_merge_graph_forward.1
= control target key start
LH: loop header
LB: loop body
LE: loop exit
PB: predicated region body
PF: predicated region fallthrough
CT: control target
= control target key end

     0   :  { %vm31_vm0 = vcmask 261120   ;;  %v3347_v2 = vmov 0.0   ;;  %vm3348_vm1 = vmmov 0   ;;  %s3349_s19 = smov 64   ;;  %s3350_s20 = smov 32   ;;  %vm1111_vm2 = vcmask 523264   ;;  %s4104_s0 = inlined_call_operand.vmem [shape: f32[488,128], index: 0, kind: input, shape index: {}]   ;;  %s4105_s2 = inlined_call_operand.vmem [shape: f32[248,128], index: 2, kind: input, shape index: {}]   ;;  %s4106_s1 = inlined_call_operand.vmem [shape: f32[8,128], index: 1, kind: input, shape index: {}]   ;;  %s4107_s3 = inlined_call_operand.vmem [shape: f32[8,128], index: 3, kind: output, shape index: {}]  }
   0x1   :  { %v25_v0 = vld [vmem:[%s4104_s0 + $0x18] sm:$0xff]  ;;  %v24_v1 = vld [vmem:[%s4104_s0 + $0x10] sm:$0xff]  ;;  %2932 = vmatprep.subr.mxu0 %v3347_v2  ;;  %2940 = vmatprep.mubr.msk.f32.mxu0 %vm3348_vm1, %v3347_v2  ;;  %v14_v3 = vld [vmem:[%s4105_s2] sm:$0xff]  ;;  %s3351_s21 = smov 96   ;;  %vm1276_vm4 = vcmask 195584  }
   0x2   :  { %2890 = vmatprep.subr.mxu1 %v25_v0  ;;  %v23_v4 = vld [vmem:[%s4104_s0 + $0x8] sm:$0xff]  ;;  %2898 = vmatprep.mubr.msk.f32.mxu1 %vm31_vm0, %v14_v3  ;;  %v3391_v5 = vld [vmem:[%s4104_s0 + $0x38] sm:$0xff]  ;;  %v22_v6 = vld [vmem:[%s4104_s0] sm:$0xff] }
   0x3   :  { %2891 = vmatpush3.msra.mxu1 %v25_v0  ;;  %2933 = vmatpush3.msra.mxu0 %v3391_v5  ;;  %v3400_v7 = vld [vmem:[%s4104_s0 + $0x30] sm:$0xff]  ;;  %v15_v8 = vld [vmem:[%s4105_s2 + $0x8] sm:$0xff]  ;;  %v17_v11 = vld [vmem:[%s4105_s2 + $0x18] sm:$0xff] }
   0x4   :  { %2892 = vmatprep.subr.mxu1 %v24_v1  ;;  %2934 = vmatprep.subr.mxu0 %v3347_v2  ;;  %v16_v9 = vld [vmem:[%s4105_s2 + $0x10] sm:$0xff]  ;;  %v3413_v10 = vld [vmem:[%s4104_s0 + $0x28] sm:$0xff]  ;;  %v18_v12 = vld [vmem:[%s4105_s2 + $0x20] sm:$0xff] }
   0x5   :  { %2893 = vmatpush3.msra.mxu1 %v24_v1  ;;  %2935 = vmatpush3.msra.mxu0 %v3400_v7  ;;  %v3431_v13 = vld [vmem:[%s4104_s0 + $0x20] sm:$0xff]  ;;  %v19_v14 = vld [vmem:[%s4105_s2 + $0x28] sm:$0xff]  ;;  %v20_v15 = vld [vmem:[%s4105_s2 + $0x30] sm:$0xff] }
   0x6   :  { %2894 = vmatprep.subr.mxu1 %v23_v4  ;;  %2936 = vmatprep.subr.mxu0 %v3347_v2  ;;  %v21_v16 = vld [vmem:[%s4105_s2 + $0x38] sm:$0xff]  ;;  %v2646_v17 = vld [vmem:[%s4106_s1] ss:$0 sm:$0xff] }
   0x7   :  { %2895 = vmatpush3.msra.mxu1 %v23_v4  ;;  %2937 = vmatpush3.msra.mxu0 %v3413_v10  ;;  %v239_v48 = vld [vmem:[%s4105_s2 + $0x40] sm:$0xff] }
   0x8   :  { %2896 = vmatprep.subr.mxu1 %v22_v6  ;;  %2938 = vmatprep.subr.mxu0 %v3347_v2  ;;  %v269_v49 = vsub.f32 1.0, %v239_v48 }
   0x9   :  { %2897 = vmatpush3.msra.mxu1 %v22_v6  ;;  %2939 = vmatpush3.msra.mxu0 %v3431_v13 }
   0xa   :  { %2899 = vmatmul.mubr.msk.f32.vlgmr.msra.gmra.mxu1 %vm31_vm0, %v15_v8  ;;  %2910 = vmatprep.subr.mxu1 %v3347_v2  ;;  %v270_v50 = vmul.f32 0.0, %v269_v49 }
   0xb   :  { %2901 = vmatprep.mubr.msk.f32.mxu1 %vm31_vm0, %v16_v9  ;;  %2911 = vmatpush3.msra.mxu1 %v3391_v5 }
   0xc   :  { %2912 = vmatprep.subr.mxu1 %v3347_v2  ;;  %2954 = vmatprep.subr.mxu0 %v3347_v2 }
   0xd   :  { %2913 = vmatpush3.msra.mxu1 %v3400_v7 }
   0xe   :  { %2902 = vmatmul.mubr.msk.f32.gmra.mxu1 %vm31_vm0, %v17_v11  ;;  %2914 = vmatprep.subr.mxu1 %v3347_v2 }
   0xf   :  { %2904 = vmatprep.mubr.msk.f32.mxu1 %vm31_vm0, %v18_v12  ;;  %2915 = vmatpush3.msra.mxu1 %v3413_v10 }
  0x10   :  { %2916 = vmatprep.subr.mxu1 %v3347_v2 }
  0x11   :  { %2917 = vmatpush3.msra.mxu1 %v3431_v13 }
  0x12   :  { %2905 = vmatmul.mubr.msk.f32.gmra.mxu1 %vm31_vm0, %v19_v14  ;;  %2921 = vmatprep.subr.mxu1 %v3347_v2 }
  0x13   :  { %2907 = vmatprep.mubr.msk.f32.mxu1 %vm31_vm0, %v20_v15  ;;  %v352_v15 = vld [vmem:[%s4105_s2 + $0x48] sm:$0xff] }
  0x16   :  { %2908 = vmatmul.mubr.msk.f32.gmra.mxu1 %vm31_vm0, %v21_v16 }
  0x17   :  { %2918 = vmatprep.mubr.msk.f32.mxu1 %vm3348_vm1, %v3347_v2 }
  0x1a   :  { %2919 = vmatmul.mubr.f32.vlgmr.msra.gmra.mxu1 %v3347_v2 }
  0x1b   :  { %2922 = vmatpush3.msra.mxu1 %v3391_v5  ;;  %2929 = vmatprep.mubr.msk.f32.mxu1 %vm3348_vm1, %v3347_v2 }
  0x1c   :  { %2923 = vmatprep.subr.mxu1 %v3347_v2 }
  0x1d   :  { %2924 = vmatpush3.msra.mxu1 %v3400_v7 }
  0x1e   :  { %2925 = vmatprep.subr.mxu1 %v3347_v2 }
  0x1f   :  { %2926 = vmatpush3.msra.mxu1 %v3413_v10 }
  0x20   :  { %2927 = vmatprep.subr.mxu1 %v3347_v2 }
  0x21   :  { %2928 = vmatpush3.msra.mxu1 %v3431_v13 }
  0x22   :  { %2943 = vmatprep.subr.mxu1 %v3347_v2 }
  0xca   :  { %v2900_v18 = vpop.f32.mrf.mxu1 }
  0xcb   :  { %v3472_v19 = vadd.f32 %v2900_v18, %v2646_v17  ;;  %v386_v18 = vsub.f32 1.0, %v352_v15 }
  0xcc   :  { %v122_v20 = vpop.f32.mrf.mxu1 }
  0xcd   :  { %v123_v32 = vadd.f32 %v2646_v17, %v122_v20 }
  0xce   :  { %v2903_v21 = vpop.f32.mrf.mxu1 }
  0xcf   :  { %v3474_v22 = vadd.f32 %v2903_v21, %v2646_v17 }
  0xd0   :  { %v132_v23 = vpop.f32.mrf.mxu1 }
  0xd1   :  { %v3476_v24 = vadd.f32 %v2646_v17, %v132_v23 }
  0xd2   :  { %v2906_v25 = vpop.f32.mrf.mxu1 }
  0xd3   :  { %v3478_v26 = vadd.f32 %v2906_v25, %v2646_v17 }
  0xd4   :  { %v142_v27 = vpop.f32.mrf.mxu1 }
  0xd5   :  { %v3480_v28 = vadd.f32 %v2646_v17, %v142_v27 }
  0xd6   :  { %v2909_v29 = vpop.f32.mrf.mxu1 }
  0xd7   :  { %v3482_v30 = vadd.f32 %v2909_v29, %v2646_v17 }
  0xd8   :  { %v152_v31 = vpop.f32.mrf.mxu1 }
  0xd9   :  { %v3484_v33 = vadd.f32 %v2646_v17, %v152_v31 }
  0xda   :  { %v234_v34 = vpop.f32.mrf.mxu1 }
  0xdb   :  { %v238_v35 = vadd.f32 %v234_v34, %v123_v32 }
  0xdc   :  { %v2920_v36 = vpop.f32.mrf.mxu1 }
  0xdd   :  { %3265 = vtanh.f32 %v238_v35  ;;  %v2655_v38 = vmul.f32 -1.442695, %v238_v35 }
  0xdf   :  { %3267 = vpow2.f32 %v2655_v38 }
  0xea   :  { %v3266_v37 = vpop.eup %3265 }
  0xeb   :  { %249 = vrot.lane.b32.xlu0 %v3266_v37, %s3349_s19 }
  0xec   :  { %v3268_v39 = vpop.eup %3267 }
  0xed   :  { %v243_v40 = vadd.f32 1.0, %v3268_v39 }
  0xef   :  { %3269 = vrcp.f32 %v243_v40 }
  0xfc   :  { %v3270_v41 = vpop.eup %3269 }
  0xfd   :  { %v247_v44 = vmul.f32 0.0, %v3270_v41 }
 0x15d   :  { %v250_v42 = vpop.permute.xlu0 %249 }
 0x15e   :  { %v252_v43 = vmul.f32 %v3270_v41, %v250_v42 }
 0x160   :  { %254 = vrot.lane.b32.xlu0 %v252_v43, %s3350_s20 }
 0x1d2   :  { %v255_v45 = vpop.permute.xlu0 %254 }
 0x1d3   :  { %v257_v46 = vadd.f32 %v255_v45, %v247_v44 }
 0x1d5   :  { %3271 = vtanh.f32 %v257_v46  ;;  %273 = vrot.lane.b32.xlu0 %v257_v46, %s3351_s21 }
 0x1e2   :  { %v3272_v47 = vpop.eup %3271 }
 0x1e3   :  { %260 = vrot.lane.b32.xlu1 %v3272_v47, %s3349_s19  ;;  %v470_v47 = vld [vmem:[%s4105_s2 + $0x50] sm:$0xff] }
 0x247   :  { %v274_v51 = vpop.permute.xlu0 %273 }
 0x248   :  { %v276_v52 = vmul.f32 %v274_v51, %v239_v48 }
 0x24a   :  { %v277_v53 = vadd.f32 %v276_v52, %v270_v50 }
 0x24c   :  { %361 = vrot.lane.b32.xlu0 %v277_v53, %s3350_s20  ;;  %v394_v20 = vmul.f32 %v386_v18, %v277_v53 }
 0x255   :  { %v261_v54 = vpop.permute.xlu1 %260 }
 0x256   :  { %v263_v55 = vmul.f32 %v3270_v41, %v261_v54 }
 0x258   :  { %265 = vrot.lane.b32.xlu1 %v263_v55, %s3350_s20 }
 0x2be   :  { %v362_v8 = vpop.permute.xlu0 %361 }
 0x2ca   :  { %v266_v56 = vpop.permute.xlu1 %265 }
 0x2cb   :  { %v268_v57 = vmul.f32 %v266_v56, %v239_v48 }
 0x2cd   :  { %v271_v58 = vadd.f32 %v270_v50, %v268_v57  ;;  %v504_v50 = vsub.f32 1.0, %v470_v47 }
 0x2cf   :  { %2930 = vmatmul.mubr.msk.f32.vlgmr.msra.gmra.mxu1 %vm31_vm0, %v271_v58  ;;  %v387_v27 = vmul.f32 %v386_v18, %v271_v58 }
 0x2d0   :  { %2944 = vmatpush3.msra.mxu1 %v3391_v5  ;;  %2951 = vmatprep.mubr.msk.f32.mxu1 %vm3348_vm1, %v3347_v2 }
 0x2d1   :  { %2945 = vmatprep.subr.mxu1 %v3347_v2 }
 0x2d2   :  { %2946 = vmatpush3.msra.mxu1 %v3400_v7 }
 0x2d3   :  { %2947 = vmatprep.subr.mxu1 %v3347_v2 }
 0x2d4   :  { %2948 = vmatpush3.msra.mxu1 %v3413_v10 }
 0x2d5   :  { %2949 = vmatprep.subr.mxu1 %v3347_v2 }
 0x2d6   :  { %2950 = vmatpush3.msra.mxu1 %v3431_v13 }
 0x2d7   :  { %2965 = vmatprep.subr.mxu1 %v3347_v2 }
 0x38f   :  { %v347_v59 = vpop.f32.mrf.mxu1 }
 0x390   :  { %v351_v60 = vadd.f32 %v347_v59, %v3472_v19 }
 0x391   :  { %v2931_v61 = vpop.f32.mrf.mxu1 }
 0x392   :  { %3273 = vtanh.f32 %v351_v60  ;;  %v2657_v63 = vmul.f32 -1.442695, %v351_v60 }
 0x394   :  { %3275 = vpow2.f32 %v2657_v63 }
 0x39f   :  { %v3274_v62 = vpop.eup %3273 }
 0x3a0   :  { %366 = vrot.lane.b32.xlu1 %v3274_v62, %s3349_s19 }
 0x3a1   :  { %v3276_v0 = vpop.eup %3275 }
 0x3a2   :  { %v356_v1 = vadd.f32 1.0, %v3276_v0 }
 0x3a4   :  { %3277 = vrcp.f32 %v356_v1 }
 0x3b1   :  { %v3278_v3 = vpop.eup %3277 }
 0x3b2   :  { %v364_v9 = vmul.f32 %v3278_v3, %v362_v8 }
 0x412   :  { %v367_v4 = vpop.permute.xlu1 %366 }
 0x413   :  { %v369_v6 = vmul.f32 %v3278_v3, %v367_v4 }
 0x415   :  { %371 = vrot.lane.b32.xlu1 %v369_v6, %s3350_s20 }
 0x487   :  { %v372_v11 = vpop.permute.xlu1 %371 }
 0x488   :  { %v374_v12 = vadd.f32 %v372_v11, %v364_v9 }
 0x48a   :  { %3279 = vtanh.f32 %v374_v12 }
 0x497   :  { %v3280_v14 = vpop.eup %3279 }
 0x498   :  { %377 = vrot.lane.b32.xlu0 %v3280_v14, %s3349_s19  ;;  %v588_v14 = vld [vmem:[%s4105_s2 + $0x58] sm:$0xff] }
 0x49c   :  { %390 = vrot.lane.b32.xlu0 %v374_v12, %s3351_s21 }
 0x50a   :  { %v378_v16 = vpop.permute.xlu0 %377 }
 0x50b   :  { %v380_v17 = vmul.f32 %v3278_v3, %v378_v16 }
 0x50d   :  { %382 = vrot.lane.b32.xlu1 %v380_v17, %s3350_s20  ;;  %v622_v17 = vsub.f32 1.0, %v588_v14 }
 0x50e   :  { %v391_v19 = vpop.permute.xlu0 %390 }
 0x50f   :  { %v393_v21 = vmul.f32 %v391_v19, %v352_v15 }
 0x511   :  { %v395_v23 = vadd.f32 %v394_v20, %v393_v21 }
 0x513   :  { %479 = vrot.lane.b32.xlu0 %v395_v23, %s3350_s20  ;;  %v512_v53 = vmul.f32 %v504_v50, %v395_v23 }
 0x57f   :  { %v383_v25 = vpop.permute.xlu1 %382 }
 0x580   :  { %v385_v29 = vmul.f32 %v383_v25, %v352_v15 }
 0x582   :  { %v388_v31 = vadd.f32 %v387_v27, %v385_v29 }
 0x584   :  { %2941 = vmatmul.mubr.msk.f32.vlgmr.msra.gmra.mxu0 %vm31_vm0, %v388_v31  ;;  %v505_v56 = vmul.f32 %v504_v50, %v388_v31 }
 0x585   :  { %2955 = vmatpush3.msra.mxu0 %v3391_v5  ;;  %2962 = vmatprep.mubr.msk.f32.mxu0 %vm3348_vm1, %v3347_v2  ;;  %v480_v43 = vpop.permute.xlu0 %479 }
 0x586   :  { %2956 = vmatprep.subr.mxu0 %v3347_v2 }
 0x587   :  { %2957 = vmatpush3.msra.mxu0 %v3400_v7 }
 0x588   :  { %2958 = vmatprep.subr.mxu0 %v3347_v2 }
 0x589   :  { %2959 = vmatpush3.msra.mxu0 %v3413_v10 }
 0x58a   :  { %2960 = vmatprep.subr.mxu0 %v3347_v2 }
 0x58b   :  { %2961 = vmatpush3.msra.mxu0 %v3431_v13 }
 0x58c   :  { %2976 = vmatprep.subr.mxu0 %v3347_v2 }
 0x644   :  { %v465_v32 = vpop.f32.mrf.mxu0 }
 0x645   :  { %v469_v34 = vadd.f32 %v465_v32, %v3476_v24 }
 0x646   :  { %v2942_v35 = vpop.f32.mrf.mxu0 }
 0x647   :  { %3281 = vtanh.f32 %v469_v34  ;;  %v2659_v37 = vmul.f32 -1.442695, %v469_v34 }
 0x649   :  { %3283 = vpow2.f32 %v2659_v37 }
 0x654   :  { %v3282_v36 = vpop.eup %3281 }
 0x655   :  { %484 = vrot.lane.b32.xlu1 %v3282_v36, %s3349_s19 }
 0x656   :  { %v3284_v38 = vpop.eup %3283 }
 0x657   :  { %v474_v39 = vadd.f32 1.0, %v3284_v38 }
 0x659   :  { %3285 = vrcp.f32 %v474_v39 }
 0x666   :  { %v3286_v40 = vpop.eup %3285 }
 0x667   :  { %v482_v44 = vmul.f32 %v3286_v40, %v480_v43 }
 0x6c7   :  { %v485_v41 = vpop.permute.xlu1 %484 }
 0x6c8   :  { %v487_v42 = vmul.f32 %v3286_v40, %v485_v41 }
 0x6ca   :  { %489 = vrot.lane.b32.xlu1 %v487_v42, %s3350_s20 }
 0x73c   :  { %v490_v45 = vpop.permute.xlu1 %489 }
 0x73d   :  { %v492_v46 = vadd.f32 %v490_v45, %v482_v44 }
 0x73f   :  { %3287 = vtanh.f32 %v492_v46 }
 0x74c   :  { %v3288_v24 = vpop.eup %3287 }
 0x74d   :  { %495 = vrot.lane.b32.xlu0 %v3288_v24, %s3349_s19 }
 0x751   :  { %508 = vrot.lane.b32.xlu0 %v492_v46, %s3351_s21  ;;  %v706_v46 = vld [vmem:[%s4105_s2 + $0x60] sm:$0xff] }
 0x7bf   :  { %v496_v48 = vpop.permute.xlu0 %495 }
 0x7c0   :  { %v498_v49 = vmul.f32 %v3286_v40, %v496_v48  ;;  %v740_v48 = vsub.f32 1.0, %v706_v46 }
 0x7c2   :  { %500 = vrot.lane.b32.xlu1 %v498_v49, %s3350_s20 }
 0x7c3   :  { %v509_v51 = vpop.permute.xlu0 %508 }
 0x7c4   :  { %v511_v52 = vmul.f32 %v509_v51, %v470_v47 }
 0x7c6   :  { %v513_v54 = vadd.f32 %v512_v53, %v511_v52 }
 0x7c8   :  { %597 = vrot.lane.b32.xlu0 %v513_v54, %s3350_s20  ;;  %v630_v19 = vmul.f32 %v622_v17, %v513_v54 }
 0x834   :  { %v501_v55 = vpop.permute.xlu1 %500 }
 0x835   :  { %v503_v57 = vmul.f32 %v501_v55, %v470_v47 }
 0x837   :  { %v506_v58 = vadd.f32 %v505_v56, %v503_v57 }
 0x839   :  { %2952 = vmatmul.mubr.msk.f32.vlgmr.msra.gmra.mxu1 %vm31_vm0, %v506_v58  ;;  %v623_v25 = vmul.f32 %v622_v17, %v506_v58 }
 0x83a   :  { %2966 = vmatpush3.msra.mxu1 %v3391_v5  ;;  %2973 = vmatprep.mubr.msk.f32.mxu1 %vm3348_vm1, %v3347_v2  ;;  %v598_v8 = vpop.permute.xlu0 %597 }
 0x83b   :  { %2967 = vmatprep.subr.mxu1 %v3347_v2 }
 0x83c   :  { %2968 = vmatpush3.msra.mxu1 %v3400_v7 }
 0x83d   :  { %2969 = vmatprep.subr.mxu1 %v3347_v2 }
 0x83e   :  { %2970 = vmatpush3.msra.mxu1 %v3413_v10 }
 0x83f   :  { %2971 = vmatprep.subr.mxu1 %v3347_v2 }
 0x840   :  { %2972 = vmatpush3.msra.mxu1 %v3431_v13 }
 0x841   :  { %2987 = vmatprep.subr.mxu1 %v3347_v2 }
 0x8f9   :  { %v583_v59 = vpop.f32.mrf.mxu1 }
 0x8fa   :  { %v587_v60 = vadd.f32 %v583_v59, %v3474_v22 }
 0x8fb   :  { %v2953_v61 = vpop.f32.mrf.mxu1 }
 0x8fc   :  { %3289 = vtanh.f32 %v587_v60  ;;  %v2661_v63 = vmul.f32 -1.442695, %v587_v60 }
 0x8fe   :  { %3291 = vpow2.f32 %v2661_v63 }
 0x909   :  { %v3290_v62 = vpop.eup %3289 }
 0x90a   :  { %602 = vrot.lane.b32.xlu1 %v3290_v62, %s3349_s19 }
 0x90b   :  { %v3292_v0 = vpop.eup %3291 }
 0x90c   :  { %v592_v1 = vadd.f32 1.0, %v3292_v0 }
 0x90e   :  { %3293 = vrcp.f32 %v592_v1 }
 0x91b   :  { %v3294_v3 = vpop.eup %3293 }
 0x91c   :  { %v600_v9 = vmul.f32 %v3294_v3, %v598_v8 }
 0x97c   :  { %v603_v4 = vpop.permute.xlu1 %602 }
 0x97d   :  { %v605_v6 = vmul.f32 %v3294_v3, %v603_v4  ;;  %v824_v4 = vld [vmem:[%s4105_s2 + $0x68] sm:$0xff] }
 0x97f   :  { %607 = vrot.lane.b32.xlu1 %v605_v6, %s3350_s20 }
 0x9f1   :  { %v608_v11 = vpop.permute.xlu1 %607 }
 0x9f2   :  { %v610_v12 = vadd.f32 %v608_v11, %v600_v9  ;;  %v858_v9 = vsub.f32 1.0, %v824_v4 }
 0x9f4   :  { %3295 = vtanh.f32 %v610_v12 }
 0xa01   :  { %v3296_v22 = vpop.eup %3295 }
 0xa02   :  { %613 = vrot.lane.b32.xlu0 %v3296_v22, %s3349_s19 }
 0xa06   :  { %626 = vrot.lane.b32.xlu0 %v610_v12, %s3351_s21 }
 0xa74   :  { %v614_v15 = vpop.permute.xlu0 %613 }
 0xa75   :  { %v616_v16 = vmul.f32 %v3294_v3, %v614_v15 }
 0xa77   :  { %618 = vrot.lane.b32.xlu1 %v616_v16, %s3350_s20 }
 0xa78   :  { %v627_v18 = vpop.permute.xlu0 %626 }
 0xa79   :  { %v629_v20 = vmul.f32 %v627_v18, %v588_v14 }
 0xa7b   :  { %v631_v21 = vadd.f32 %v630_v19, %v629_v20 }
 0xa7d   :  { %715 = vrot.lane.b32.xlu0 %v631_v21, %s3350_s20  ;;  %v748_v51 = vmul.f32 %v740_v48, %v631_v21 }
 0xae9   :  { %v619_v23 = vpop.permute.xlu1 %618 }
 0xaea   :  { %v621_v27 = vmul.f32 %v619_v23, %v588_v14 }
 0xaec   :  { %v624_v29 = vadd.f32 %v623_v25, %v621_v27 }
 0xaee   :  { %2963 = vmatmul.mubr.msk.f32.vlgmr.msra.gmra.mxu0 %vm31_vm0, %v624_v29  ;;  %v741_v54 = vmul.f32 %v740_v48, %v624_v29 }
 0xaef   :  { %2977 = vmatpush3.msra.mxu0 %v3391_v5  ;;  %2984 = vmatprep.mubr.msk.f32.mxu0 %vm3348_vm1, %v3347_v2  ;;  %v716_v42 = vpop.permute.xlu0 %715 }
 0xaf0   :  { %2978 = vmatprep.subr.mxu0 %v3347_v2 }
 0xaf1   :  { %2979 = vmatpush3.msra.mxu0 %v3400_v7 }
 0xaf2   :  { %2980 = vmatprep.subr.mxu0 %v3347_v2 }
 0xaf3   :  { %2981 = vmatpush3.msra.mxu0 %v3413_v10 }
 0xaf4   :  { %2982 = vmatprep.subr.mxu0 %v3347_v2 }
 0xaf5   :  { %2983 = vmatpush3.msra.mxu0 %v3431_v13 }
 0xbae   :  { %v701_v31 = vpop.f32.mrf.mxu0 }
 0xbaf   :  { %v705_v32 = vadd.f32 %v701_v31, %v3480_v28 }
 0xbb0   :  { %v2964_v34 = vpop.f32.mrf.mxu0 }
 0xbb1   :  { %3297 = vtanh.f32 %v705_v32  ;;  %v2663_v36 = vmul.f32 -1.442695, %v705_v32 }
 0xbb3   :  { %3299 = vpow2.f32 %v2663_v36  ;;  %v1108_v36 = vld [vmem:[%s4104_s0 + $0x68] sm:$0xff] }
 0xbbe   :  { %v3298_v35 = vpop.eup %3297 }
 0xbbf   :  { %720 = vrot.lane.b32.xlu1 %v3298_v35, %s3349_s19  ;;  %v1110_v35 = vld [vmem:[%s4104_s0 + $0x78] sm:$0xff] }
 0xbc0   :  { %v3300_v37 = vpop.eup %3299  ;;  %2998 = vmatprep.subr.mxu0 %v1110_v35 }
 0xbc1   :  { %v710_v38 = vadd.f32 1.0, %v3300_v37  ;;  %v1097_v37 = vld [vmem:[%s4105_s2 + $0x80] sm:$0xff] }
 0xbc3   :  { %3301 = vrcp.f32 %v710_v38  ;;  %v1107_v38 = vld [vmem:[%s4104_s0 + $0x60] sm:$0xff] }
 0xbd0   :  { %v3302_v39 = vpop.eup %3301 }
 0xbd1   :  { %v718_v43 = vmul.f32 %v3302_v39, %v716_v42  ;;  %v1103_v42 = vld [vmem:[%s4104_s0 + $0x40] sm:$0xff] }
 0xc31   :  { %v721_v40 = vpop.permute.xlu1 %720 }
 0xc32   :  { %v723_v41 = vmul.f32 %v3302_v39, %v721_v40  ;;  %v1105_v40 = vld [vmem:[%s4104_s0 + $0x50] sm:$0xff] }
 0xc34   :  { %725 = vrot.lane.b32.xlu1 %v723_v41, %s3350_s20  ;;  %v1104_v41 = vld [vmem:[%s4104_s0 + $0x48] sm:$0xff] }
 0xca6   :  { %v726_v44 = vpop.permute.xlu1 %725 }
 0xca7   :  { %v728_v45 = vadd.f32 %v726_v44, %v718_v43  ;;  %v1098_v43 = vld [vmem:[%s4105_s2 + $0x88] sm:$0xff]  ;;  %v1099_v44 = vld [vmem:[%s4105_s2 + $0x90] sm:$0xff] }
 0xca9   :  { %3303 = vtanh.f32 %v728_v45 }
 0xcb6   :  { %v3304_v28 = vpop.eup %3303 }
 0xcb7   :  { %731 = vrot.lane.b32.xlu0 %v3304_v28, %s3349_s19 }
 0xcbb   :  { %744 = vrot.lane.b32.xlu0 %v728_v45, %s3351_s21  ;;  %v1100_v45 = vld [vmem:[%s4105_s2 + $0x98] sm:$0xff] }
 0xd29   :  { %v732_v24 = vpop.permute.xlu0 %731 }
 0xd2a   :  { %v734_v47 = vmul.f32 %v3302_v39, %v732_v24  ;;  %v1106_v39 = vld [vmem:[%s4104_s0 + $0x58] sm:$0xff] }
 0xd2c   :  { %736 = vrot.lane.b32.xlu1 %v734_v47, %s3350_s20 }
 0xd2d   :  { %v745_v49 = vpop.permute.xlu0 %744 }
 0xd2e   :  { %v747_v50 = vmul.f32 %v745_v49, %v706_v46 }
 0xd30   :  { %v749_v52 = vadd.f32 %v748_v51, %v747_v50 }
 0xd32   :  { %833 = vrot.lane.b32.xlu0 %v749_v52, %s3350_s20  ;;  %v866_v12 = vmul.f32 %v858_v9, %v749_v52 }
 0xd9e   :  { %v737_v53 = vpop.permute.xlu1 %736 }
 0xd9f   :  { %v739_v55 = vmul.f32 %v737_v53, %v706_v46  ;;  %v942_v53 = vld [vmem:[%s4105_s2 + $0x70] sm:$0xff] }
 0xda1   :  { %v742_v56 = vadd.f32 %v741_v54, %v739_v55 }
 0xda3   :  { %2974 = vmatmul.mubr.msk.f32.vlgmr.msra.gmra.mxu1 %vm31_vm0, %v742_v56  ;;  %v859_v16 = vmul.f32 %v858_v9, %v742_v56  ;;  %v976_v56 = vsub.f32 1.0, %v942_v53 }
 0xda4   :  { %2988 = vmatpush3.msra.mxu1 %v3391_v5  ;;  %2995 = vmatprep.mubr.msk.f32.mxu1 %vm3348_vm1, %v3347_v2  ;;  %v834_v0 = vpop.permute.xlu0 %833 }
 0xda5   :  { %2989 = vmatprep.subr.mxu1 %v3347_v2 }
 0xda6   :  { %2990 = vmatpush3.msra.mxu1 %v3400_v7 }
 0xda7   :  { %2991 = vmatprep.subr.mxu1 %v3347_v2 }
 0xda8   :  { %2992 = vmatpush3.msra.mxu1 %v3413_v10 }
 0xda9   :  { %2993 = vmatprep.subr.mxu1 %v3347_v2 }
 0xdaa   :  { %2994 = vmatpush3.msra.mxu1 %v3431_v13 }
 0xe63   :  { %v819_v57 = vpop.f32.mrf.mxu1 }
 0xe64   :  { %v823_v58 = vadd.f32 %v819_v57, %v3478_v26 }
 0xe65   :  { %v2975_v59 = vpop.f32.mrf.mxu1 }
 0xe66   :  { %3305 = vtanh.f32 %v823_v58  ;;  %v2665_v60 = vmul.f32 -1.442695, %v823_v58 }
 0xe68   :  { %3307 = vpow2.f32 %v2665_v60  ;;  %v1101_v60 = vld [vmem:[%s4105_s2 + $0xa0] sm:$0xff] }
 0xe73   :  { %v3306_v5 = vpop.eup %3305 }
 0xe74   :  { %838 = vrot.lane.b32.xlu1 %v3306_v5, %s3349_s19 }
 0xe75   :  { %v3308_v61 = vpop.eup %3307 }
 0xe76   :  { %v828_v7 = vadd.f32 1.0, %v3308_v61  ;;  %v1102_v61 = vld [vmem:[%s4105_s2 + $0xa8] sm:$0xff] }
 0xe78   :  { %3309 = vrcp.f32 %v828_v7  ;;  %v1225_v7 = vld [vmem:[%s4105_s2 + $0xb0] sm:$0xff] }
 0xe85   :  { %v3310_v62 = vpop.eup %3309 }
 0xe86   :  { %v836_v13 = vmul.f32 %v3310_v62, %v834_v0  ;;  %v1227_v0 = vld [vmem:[%s4105_s2 + $0xc0] sm:$0xff] }
 0xee6   :  { %v839_v63 = vpop.permute.xlu1 %838 }
 0xee7   :  { %v841_v10 = vmul.f32 %v3310_v62, %v839_v63  ;;  %v1237_v63 = vlaneseq }
 0xee9   :  { %843 = vrot.lane.b32.xlu1 %v841_v10, %s3350_s20  ;;  %v1226_v10 = vld [vmem:[%s4105_s2 + $0xb8] sm:$0xff] }
 0xf5b   :  { %v844_v1 = vpop.permute.xlu1 %843 }
 0xf5c   :  { %v846_v3 = vadd.f32 %v844_v1, %v836_v13  ;;  %v3679_v1 = vand.u32 127, %v1237_v63 }
 0xf5e   :  { %3311 = vtanh.f32 %v846_v3 }
 0xf6b   :  { %v3312_v26 = vpop.eup %3311 }
 0xf6c   :  { %849 = vrot.lane.b32.xlu0 %v3312_v26, %s3349_s19  ;;  %v3246_v26 = vtrunc.f32 %v1227_v0 }
 0xf70   :  { %862 = vrot.lane.b32.xlu0 %v846_v3, %s3351_s21  ;;  %v3244_v3 = vtrunc.f32 %v1226_v10 }
 0xfde   :  { %v850_v6 = vpop.permute.xlu0 %849 }
 0xfdf   :  { %v852_v8 = vmul.f32 %v3310_v62, %v850_v6  ;;  %v3242_v62 = vtrunc.f32 %v1225_v7  ;;  %v1229_v6 = vld [vmem:[%s4105_s2 + $0xd0] sm:$0xff] }
 0xfe1   :  { %854 = vrot.lane.b32.xlu1 %v852_v8, %s3350_s20  ;;  %v3243_v13 = vcvt.f32.s32 %v3242_v62 }
 0xfe2   :  { %v863_v11 = vpop.permute.xlu0 %862 }
 0xfe3   :  { %v865_v22 = vmul.f32 %v863_v11, %v824_v4  ;;  %vm1239_vm3 = vcmp.eq.s32.totalorder %v3679_v1, %v3243_v13 }
 0xfe5   :  { %v3597_v14 = vadd.f32 %v866_v12, %v865_v22  ;;  %v3245_v12 = vcvt.f32.s32 %v3244_v3 }
 0xfe7   :  { %951 = vrot.lane.b32.xlu0 %v3597_v14, %s3350_s20  ;;  %v984_v59 = vmul.f32 %v976_v56, %v3597_v14  ;;  %v3247_v14 = vcvt.f32.s32 %v3246_v26  ;;  %vm1240_vm5 = vcmp.eq.s32.totalorder %v3679_v1, %v3245_v12 }
 0xfe9   :  { %vm1241_vm6 = vcmp.eq.s32.totalorder %v3679_v1, %v3247_v14 }
0x1053   :  { %v855_v15 = vpop.permute.xlu1 %854 }
0x1054   :  { %v857_v17 = vmul.f32 %v855_v15, %v824_v4  ;;  %v1228_v4 = vld [vmem:[%s4105_s2 + $0xc8] sm:$0xff]  ;;  %v3250_v15 = vtrunc.f32 %v1229_v6 }
0x1055   :  { %v3248_v22 = vtrunc.f32 %v1228_v4 }
0x1056   :  { %v3601_v18 = vadd.f32 %v859_v16, %v857_v17  ;;  %v1230_v16 = vld [vmem:[%s4105_s2 + $0xd8] sm:$0xff] }
0x1058   :  { %2985 = vmatmul.mubr.msk.f32.vlgmr.msra.gmra.mxu0 %vm31_vm0, %v3601_v18  ;;  %v977_v9 = vmul.f32 %v976_v56, %v3601_v18  ;;  %v3249_v18 = vcvt.f32.s32 %v3248_v22 }
0x1059   :  { %2999 = vmatpush3.msra.mxu0 %v1110_v35  ;;  %3014 = vmatprep.mubr.msk.f32.mxu0 %vm1111_vm2, %v1097_v37  ;;  %v952_v28 = vpop.permute.xlu0 %951  ;;  %v1397_v35 = vld [vmem:[%s4104_s0 + $0xb8] sm:$0xff]  ;;  %v1391_v37 = vld [vmem:[%s4104_s0 + $0x88] sm:$0xff] }
0x105a   :  { %vm1242_vm7 = vcmp.eq.s32.totalorder %v3679_v1, %v3249_v18 }
0x1118   :  { %v937_v19 = vpop.f32.mrf.mxu0 }
0x1119   :  { %v941_v20 = vadd.f32 %v937_v19, %v3484_v33  ;;  %v1109_v33 = vld [vmem:[%s4104_s0 + $0x70] sm:$0xff]  ;;  %v2676_v19 = vsel %vm1239_vm3, 1.0, %v3347_v2 }
0x111a   :  { %v2986_v21 = vpop.f32.mrf.mxu0  ;;  %3000 = vmatprep.subr.mxu0 %v1109_v33 }
0x111b   :  { %3313 = vtanh.f32 %v941_v20  ;;  %v2667_v25 = vmul.f32 -1.442695, %v941_v20  ;;  %3001 = vmatpush3.msra.mxu0 %v1109_v33  ;;  %v3252_v20 = vtrunc.f32 %v1230_v16  ;;  %v3251_v21 = vcvt.f32.s32 %v3250_v15  ;;  %v1392_v33 = vld [vmem:[%s4104_s0 + $0x90] sm:$0xff] }
0x111c   :  { %3002 = vmatprep.subr.mxu0 %v1108_v36 }
0x111d   :  { %3315 = vpow2.f32 %v2667_v25  ;;  %3003 = vmatpush3.msra.mxu0 %v1108_v36  ;;  %v2678_v25 = vsel %vm1241_vm6, 1.0, %v3347_v2  ;;  %vm1243_vm8 = vcmp.eq.s32.totalorder %v3679_v1, %v3251_v21  ;;  %v1396_v36 = vld [vmem:[%s4104_s0 + $0xb0] sm:$0xff] }
0x111e   :  { %3004 = vmatprep.subr.mxu0 %v1107_v38 }
0x111f   :  { %3005 = vmatpush3.msra.mxu0 %v1107_v38  ;;  %v1395_v38 = vld [vmem:[%s4104_s0 + $0xa8] sm:$0xff] }
0x1120   :  { %3006 = vmatprep.subr.mxu0 %v1106_v39 }
0x1121   :  { %3007 = vmatpush3.msra.mxu0 %v1106_v39  ;;  %v1390_v39 = vld [vmem:[%s4104_s0 + $0x80] sm:$0xff] }
0x1122   :  { %3008 = vmatprep.subr.mxu0 %v1105_v40 }
0x1123   :  { %3009 = vmatpush3.msra.mxu0 %v1105_v40  ;;  %v1394_v40 = vld [vmem:[%s4104_s0 + $0xa0] sm:$0xff] }
0x1124   :  { %3010 = vmatprep.subr.mxu0 %v1104_v41 }
0x1125   :  { %3011 = vmatpush3.msra.mxu0 %v1104_v41 }
0x1126   :  { %3012 = vmatprep.subr.mxu0 %v1103_v42 }
0x1127   :  { %3013 = vmatpush3.msra.mxu0 %v1103_v42 }
0x1128   :  { %v3314_v23 = vpop.eup %3313  ;;  %3015 = vmatmul.mubr.msk.f32.vlgmr.msra.gmra.mxu0 %vm1111_vm2, %v1098_v43  ;;  %3055 = vmatprep.subr.mxu0 %v3347_v2 }
0x1129   :  { %956 = vrot.lane.b32.xlu1 %v3314_v23, %s3349_s19  ;;  %3017 = vmatprep.mubr.msk.f32.mxu0 %vm1111_vm2, %v1099_v44  ;;  %v2677_v23 = vsel %vm1240_vm5, 1.0, %v3347_v2 }
0x112a   :  { %v3316_v27 = vpop.eup %3315 }
0x112b   :  { %v946_v29 = vadd.f32 1.0, %v3316_v27  ;;  %v3253_v27 = vcvt.f32.s32 %v3252_v20 }
0x112c   :  { %3018 = vmatmul.mubr.msk.f32.gmra.mxu0 %vm1111_vm2, %v1100_v45 }
0x112d   :  { %3317 = vrcp.f32 %v946_v29  ;;  %3020 = vmatprep.mubr.msk.f32.mxu0 %vm1111_vm2, %v1101_v60  ;;  %v3708_v29 = vsel %vm1242_vm7, 1.0, %v3347_v2  ;;  %vm1244_vm9 = vcmp.eq.s32.totalorder %v3679_v1, %v3253_v27 }
0x1130   :  { %3021 = vmatmul.mubr.msk.f32.gmra.mxu0 %vm1111_vm2, %v1102_v61  ;;  %vm1863_vm2 = vcmask 64512  }
0x1131   :  { %3063 = vmatprep.mubr.msk.f32.mxu0 %vm3348_vm1, %v3347_v2 }
0x113a   :  { %v3318_v31 = vpop.eup %3317 }
0x113b   :  { %v954_v46 = vmul.f32 %v3318_v31, %v952_v28  ;;  %v1579_v28 = vld [vmem:[%s4104_s0 + $0xd8] sm:$0xff] }
0x119b   :  { %v957_v32 = vpop.permute.xlu1 %956 }
0x119c   :  { %v959_v34 = vmul.f32 %v3318_v31, %v957_v32  ;;  %v3719_v32 = vsel %vm1244_vm9, 1.0, %v3347_v2 }
0x119e   :  { %961 = vrot.lane.b32.xlu1 %v959_v34, %s3350_s20  ;;  %v1393_v34 = vld [vmem:[%s4104_s0 + $0x98] sm:$0xff] }
0x119f   :  { %3056 = vmatpush3.msra.mxu0 %v1393_v34 }
0x11a0   :  { %3057 = vmatprep.subr.mxu0 %v3347_v2 }
0x11a1   :  { %3058 = vmatpush3.msra.mxu0 %v1392_v33 }
0x11a2   :  { %3059 = vmatprep.subr.mxu0 %v3347_v2 }
0x11a3   :  { %3060 = vmatpush3.msra.mxu0 %v1391_v37 }
0x11a4   :  { %3061 = vmatprep.subr.mxu0 %v3347_v2 }
0x11a5   :  { %3062 = vmatpush3.msra.mxu0 %v1390_v39 }
0x11a6   :  { %3089 = vmatprep.subr.mxu0 %v3347_v2 }
0x11e8   :  { %v3016_v49 = vpop.f32.mrf.mxu0 }
0x11ea   :  { %v1196_v50 = vpop.f32.mrf.mxu0 }
0x11ec   :  { %v3651_v51 = vpop.f32.mrf.mxu0 }
0x11ee   :  { %v1206_v52 = vpop.f32.mrf.mxu0 }
0x11ef   :  { %3023 = vmatprep.subr.mxu1 %v1206_v52 }
0x1210   :  { %v962_v24 = vpop.permute.xlu1 %961 }
0x1211   :  { %v964_v47 = vadd.f32 %v962_v24, %v954_v46 }
0x1213   :  { %3319 = vtanh.f32 %v964_v47 }
0x1220   :  { %v3320_v48 = vpop.eup %3319 }
0x1221   :  { %967 = vrot.lane.b32.xlu0 %v3320_v48, %s3349_s19 }
0x1225   :  { %980 = vrot.lane.b32.xlu0 %v964_v47, %s3351_s21  ;;  %v1577_v47 = vld [vmem:[%s4104_s0 + $0xc8] sm:$0xff] }
0x1293   :  { %v968_v54 = vpop.permute.xlu0 %967 }
0x1294   :  { %v970_v55 = vmul.f32 %v3318_v31, %v968_v54  ;;  %v3711_v31 = vsel %vm1243_vm8, 1.0, %v3347_v2 }
0x1296   :  { %972 = vrot.lane.b32.xlu1 %v970_v55, %s3350_s20 }
0x1297   :  { %v981_v57 = vpop.permute.xlu0 %980 }
0x1298   :  { %v983_v58 = vmul.f32 %v981_v57, %v942_v53 }
0x129a   :  { %v985_v5 = vadd.f32 %v984_v59, %v983_v58 }
0x129c   :  { %1069 = vrot.lane.b32.xlu0 %v985_v5, %s3350_s20 }
0x1308   :  { %v973_v8 = vpop.permute.xlu1 %972 }
0x1309   :  { %v975_v11 = vmul.f32 %v973_v8, %v942_v53  ;;  %v3802_v53 = vpop.f32.mrf.mxu0 }
0x130b   :  { %v3692_v17 = vadd.f32 %v977_v9, %v975_v11  ;;  %v3808_v54 = vpop.f32.mrf.mxu0 }
0x130d   :  { %2996 = vmatmul.mubr.msk.f32.vlgmr.msra.gmra.mxu1 %vm31_vm0, %v3692_v17 }
0x130e   :  { %3024 = vmatpush3.msra.mxu1 %v1206_v52  ;;  %3029 = vmatprep.mubr.msk.f32.mxu1 %vm1276_vm4, %v2676_v19  ;;  %v1576_v52 = vld [vmem:[%s4104_s0 + $0xc0] sm:$0xff] }
0x130f   :  { %3025 = vmatprep.subr.mxu1 %v3016_v49 }
0x1310   :  { %3026 = vmatpush3.msra.mxu1 %v3016_v49 }
0x1311   :  { %3027 = vmatprep.subr.mxu1 %v1196_v50 }
0x1312   :  { %3028 = vmatpush3.msra.mxu1 %v1196_v50 }
0x1313   :  { %3030 = vmatmul.mubr.msk.f32.vlgmr.msra.gmra.mxu1 %vm1276_vm4, %v2677_v23  ;;  %3038 = vmatprep.subr.mxu1 %v3347_v2 }
0x1314   :  { %3032 = vmatprep.mubr.msk.f32.mxu1 %vm1276_vm4, %v2678_v25  ;;  %3039 = vmatpush3.msra.mxu1 %v1397_v35 }
0x1315   :  { %3040 = vmatprep.subr.mxu1 %v3347_v2 }
0x1316   :  { %3041 = vmatpush3.msra.mxu1 %v1396_v36 }
0x1317   :  { %3033 = vmatmul.mubr.msk.f32.gmra.mxu1 %vm1276_vm4, %v3708_v29  ;;  %3042 = vmatprep.subr.mxu1 %v3347_v2 }
0x1318   :  { %3035 = vmatprep.mubr.msk.f32.mxu1 %vm1276_vm4, %v3711_v31  ;;  %3043 = vmatpush3.msra.mxu1 %v1395_v38 }
0x1319   :  { %3044 = vmatprep.subr.mxu1 %v3347_v2 }
0x131a   :  { %3045 = vmatpush3.msra.mxu1 %v1394_v40  ;;  %v1257_v40 = vld [vmem:[%s4105_s2 + $0xe0] sm:$0xff] }
0x131b   :  { %3036 = vmatmul.mubr.msk.f32.gmra.mxu1 %vm1276_vm4, %v3719_v32  ;;  %3072 = vmatprep.subr.mxu1 %v3347_v2 }
0x131c   :  { %3046 = vmatprep.mubr.msk.f32.mxu1 %vm3348_vm1, %v3347_v2 }
0x13cd   :  { %v1055_v41 = vpop.f32.mrf.mxu1 }
0x13ce   :  { %v1059_v42 = vadd.f32 %v1055_v41, %v3482_v30  ;;  %v1578_v30 = vld [vmem:[%s4104_s0 + $0xd0] sm:$0xff]  ;;  %v3254_v41 = vtrunc.f32 %v1257_v40 }
0x13cf   :  { %v2997_v43 = vpop.f32.mrf.mxu1 }
0x13d0   :  { %3321 = vtanh.f32 %v1059_v42  ;;  %v2669_v55 = vmul.f32 -1.442695, %v1059_v42  ;;  %v1258_v42 = vld [vmem:[%s4105_s2 + $0xe8] sm:$0xff]  ;;  %v3255_v43 = vcvt.f32.s32 %v3254_v41 }
0x13d2   :  { %3323 = vpow2.f32 %v2669_v55 }
0x13d3   :  { %v3758_v44 = vpop.f32.mrf.mxu1 }
0x13d5   :  { %v3760_v45 = vpop.f32.mrf.mxu1 }
0x13d6   :  { %3064 = vmatmul.mubr.msk.f32.vlgmr.msra.gmra.mxu0 %vm31_vm0, %v3760_v45 }
0x13d7   :  { %v3034_v46 = vpop.f32.mrf.mxu1  ;;  %3066 = vmatprep.mubr.msk.f32.mxu0 %vm3348_vm1, %v3347_v2 }
0x13d8   :  { %3047 = vmatmul.mubr.msk.f32.vlgmr.msra.gmra.mxu1 %vm31_vm0, %v3034_v46  ;;  %v3256_v46 = vtrunc.f32 %v1258_v42 }
0x13d9   :  { %v3773_v24 = vpop.f32.mrf.mxu1  ;;  %3049 = vmatprep.mubr.msk.f32.mxu1 %vm3348_vm1, %v3347_v2  ;;  %3073 = vmatpush3.msra.mxu1 %v1579_v28  ;;  %v3829_v28 = vshrl.u32 %v1237_v63, 7 }
0x13da   :  { %3067 = vmatmul.mubr.msk.f32.gmra.mxu0 %vm31_vm0, %v3758_v44  ;;  %3074 = vmatprep.subr.mxu1 %v3347_v2 }
0x13db   :  { %v3037_v48 = vpop.f32.mrf.mxu1  ;;  %3069 = vmatprep.mubr.msk.f32.mxu0 %vm3348_vm1, %v3347_v2  ;;  %3075 = vmatpush3.msra.mxu1 %v1578_v30  ;;  %v1259_v30 = vld [vmem:[%s4105_s2 + $0xf0] sm:$0xff]  ;;  %vm1267_vm13 = vcmp.eq.s32.totalorder %v3829_v28, %v3255_v43  ;;  %vm2060_vm7 = vcmp.lt.s32.totalorder %v3829_v28, 2 }
0x13dc   :  { %3076 = vmatprep.subr.mxu1 %v3347_v2 }
0x13dd   :  { %v3322_v49 = vpop.eup %3321  ;;  %v1381_v50 = vpop.f32.mrf.mxu1  ;;  %3077 = vmatpush3.msra.mxu1 %v1577_v47 }
0x13de   :  { %3050 = vmatmul.mubr.msk.f32.gmra.mxu1 %vm31_vm0, %v1381_v50  ;;  %3070 = vmatmul.mubr.msk.f32.gmra.mxu0 %vm31_vm0, %v3773_v24  ;;  %v3258_v50 = vtrunc.f32 %v1259_v30 }
0x13df   :  { %1074 = vrot.lane.b32.xlu1 %v3322_v49, %s3349_s19  ;;  %3052 = vmatprep.mubr.msk.f32.mxu1 %vm3348_vm1, %v3347_v2  ;;  %v3324_v56 = vpop.eup %3323  ;;  %v1265_v49 = vadd.s32 8, %v3829_v28 }
0x13e0   :  { %3078 = vmatprep.subr.mxu1 %v3347_v2  ;;  %3095 = vmatprep.mubr.msk.f32.mxu0 %vm3348_vm1, %v3347_v2  ;;  %v1064_v57 = vadd.f32 1.0, %v3324_v56 }
0x13e1   :  { %3079 = vmatpush3.msra.mxu1 %v1576_v52  ;;  %v1070_v52 = vpop.permute.xlu0 %1069 }
0x13e2   :  { %3053 = vmatmul.mubr.msk.f32.gmra.mxu1 %vm31_vm0, %v3037_v48  ;;  %3104 = vmatprep.subr.mxu1 %v3347_v2  ;;  %3325 = vrcp.f32 %v1064_v57  ;;  %v3257_v48 = vcvt.f32.s32 %v3256_v46  ;;  %v3845_v57 = vsel %vm1267_vm13, 1.0, %v3347_v2 }
0x13e3   :  { %3080 = vmatprep.mubr.msk.f32.mxu1 %vm3348_vm1, %v3347_v2 }
0x13e4   :  { %vm1268_vm14 = vcmp.eq.s32.totalorder %v1265_v49, %v3257_v48 }
0x13e6   :  { %3081 = vmatmul.mubr.msk.f32.vlgmr.msra.gmra.mxu1 %vm31_vm0, %v3651_v51 }
0x13e7   :  { %3083 = vmatprep.mubr.msk.f32.mxu1 %vm3348_vm1, %v3347_v2 }
0x13ea   :  { %3084 = vmatmul.mubr.msk.f32.gmra.mxu1 %vm31_vm0, %v3808_v54 }
0x13eb   :  { %3086 = vmatprep.mubr.msk.f32.mxu1 %vm3348_vm1, %v3347_v2 }
0x13ee   :  { %3087 = vmatmul.mubr.msk.f32.gmra.mxu1 %vm31_vm0, %v3802_v53 }
0x13ef   :  { %3110 = vmatprep.mubr.msk.f32.mxu1 %vm3348_vm1, %v3347_v2  ;;  %v3818_v58 = vpop.eup %3325 }
0x13f0   :  { %v1072_v63 = vmul.f32 %v3818_v58, %v1070_v52 }
0x1451   :  { %v1075_v59 = vpop.permute.xlu1 %1074 }
0x1452   :  { %v1077_v5 = vmul.f32 %v3818_v58, %v1075_v59 }
0x1454   :  { %1079 = vrot.lane.b32.xlu1 %v1077_v5, %s3350_s20 }
0x1496   :  { %v1562_v60 = vpop.f32.mrf.mxu0 }
0x1498   :  { %v1473_v61 = vpop.f32.mrf.mxu1  ;;  %v3065_v7 = vpop.f32.mrf.mxu0 }
0x1499   :  { %v1563_v12 = vadd.f32 %v1562_v60, %v1473_v61  ;;  %v3259_v60 = vcvt.f32.s32 %v3258_v50  ;;  %v1266_v61 = vadd.s32 16, %v3829_v28  ;;  %v3855_v7 = vsel %vm1268_vm14, 1.0, %v3347_v2 }
0x149a   :  { %v3048_v62 = vpop.f32.mrf.mxu1  ;;  %v1567_v10 = vpop.f32.mrf.mxu0 }
0x149b   :  { %vm1269_vm15 = vcmp.eq.s32.totalorder %v1266_v61, %v3259_v60  ;;  %v1060_v60 = vld [vmem:[%s4105_s2 + $0x78] sm:$0xff] }
0x149c   :  { %v3068_v0 = vpop.f32.mrf.mxu0  ;;  %v3862_v62 = vsel %vm1269_vm15, 1.0, %v3347_v2 }
0x149e   :  { %v1478_v13 = vpop.f32.mrf.mxu1  ;;  %v1572_v3 = vpop.f32.mrf.mxu0 }
0x149f   :  { %v1568_v22 = vadd.f32 %v1567_v10, %v1478_v13 }
0x14a0   :  { %v3051_v26 = vpop.f32.mrf.mxu1  ;;  %v3071_v4 = vpop.f32.mrf.mxu0 }
0x14a2   :  { %v1483_v6 = vpop.f32.mrf.mxu1 }
0x14a3   :  { %v1573_v18 = vadd.f32 %v1572_v3, %v1483_v6 }
0x14a4   :  { %v3054_v8 = vpop.f32.mrf.mxu1 }
0x14a6   :  { %v1655_v9 = vpop.f32.mrf.mxu1 }
0x14a7   :  { %v1669_v15 = vadd.f32 %v1655_v9, %v1563_v12 }
0x14a8   :  { %v3082_v11 = vpop.f32.mrf.mxu1 }
0x14a9   :  { %v1675_v23 = vmul.f32 0.2, %v1669_v15  ;;  %vm1672_vm11 = vcmp.gt.f32.partialorder %v1669_v15, 0.0 }
0x14aa   :  { %v1660_v14 = vpop.f32.mrf.mxu1 }
0x14ab   :  { %v1670_v16 = vadd.f32 %v1660_v14, %v1568_v22  ;;  %v1678_v33 = vsel %vm1672_vm11, %v1669_v15, %v1675_v23 }
0x14ac   :  { %v3085_v19 = vpop.f32.mrf.mxu1  ;;  %v1681_v39 = vmul.f32 1.442695, %v1678_v33 }
0x14ad   :  { %v1676_v20 = vmul.f32 0.2, %v1670_v16  ;;  %vm1673_vm10 = vcmp.gt.f32.partialorder %v1670_v16, 0.0 }
0x14ae   :  { %v1665_v21 = vpop.f32.mrf.mxu1 }
0x14af   :  { %v1671_v25 = vadd.f32 %v1665_v21, %v1573_v18  ;;  %v1679_v34 = vsel %vm1673_vm10, %v1670_v16, %v1676_v20 }
0x14b0   :  { %v3088_v27 = vpop.f32.mrf.mxu1  ;;  %v1683_v37 = vmul.f32 1.442695, %v1679_v34 }
0x14b1   :  { %vm1674_vm12 = vcmp.gt.f32.partialorder %v1671_v25, 0.0  ;;  %v1677_v35 = vmul.f32 0.2, %v1671_v25 }
0x14b3   :  { %v1680_v36 = vsel %vm1674_vm12, %v1671_v25, %v1677_v35 }
0x14b4   :  { %v1685_v38 = vmul.f32 1.442695, %v1680_v36 }
0x14b6   :  { %3327 = vpow2.f32 %v1685_v38 }
0x14b7   :  { %3329 = vpow2.f32 %v1683_v37 }
0x14b8   :  { %3331 = vpow2.f32 %v1681_v39 }
0x14c3   :  { %v3834_v47 = vpop.eup %3327 }
0x14c4   :  { %3090 = vmatpush3.msra.mxu0 %v3834_v47  ;;  %v3839_v55 = vpop.eup %3329 }
0x14c5   :  { %3091 = vmatprep.subr.mxu0 %v3347_v2  ;;  %v3332_v59 = vpop.eup %3331 }
0x14c6   :  { %v1080_v56 = vpop.permute.xlu1 %1079  ;;  %3092 = vmatpush3.msra.mxu0 %v3839_v55 }
0x14c7   :  { %v1082_v5 = vadd.f32 %v1080_v56, %v1072_v63  ;;  %3093 = vmatprep.subr.mxu0 %v3347_v2 }
0x14c8   :  { %3094 = vmatpush3.msra.mxu0 %v3332_v59 }
0x14c9   :  { %3333 = vtanh.f32 %v1082_v5  ;;  %3096 = vmatmul.mubr.msk.f32.vlgmr.msra.gmra.mxu0 %vm1276_vm4, %v3845_v57  ;;  %3119 = vmatprep.subr.mxu0 %v3347_v2 }
0x14ca   :  { %3098 = vmatprep.mubr.msk.f32.mxu0 %vm3348_vm1, %v3347_v2 }
0x14cd   :  { %3099 = vmatmul.mubr.msk.f32.gmra.mxu0 %vm1276_vm4, %v3855_v7 }
0x14ce   :  { %3101 = vmatprep.mubr.msk.f32.mxu0 %vm3348_vm1, %v3347_v2 }
0x14d1   :  { %3102 = vmatmul.mubr.msk.f32.gmra.mxu0 %vm1276_vm4, %v3862_v62 }
0x14d2   :  { %3121 = vmatprep.mubr.msk.f32.mxu0 %vm3348_vm1, %v3347_v2 }
0x14d6   :  { %v3334_v10 = vpop.eup %3333 }
0x14d7   :  { %1085 = vrot.lane.b32.xlu0 %v3334_v10, %s3349_s19 }
0x1549   :  { %v1086_v0 = vpop.permute.xlu0 %1085 }
0x154a   :  { %v1088_v13 = vmul.f32 %v3818_v58, %v1086_v0  ;;  %v1094_v0 = vsub.f32 1.0, %v1060_v60 }
0x154c   :  { %1090 = vrot.lane.b32.xlu1 %v1088_v13, %s3350_s20  ;;  %v2220_v13 = vld [vmem:[%s4104_s0 + $0xf8] sm:$0xff] }
0x1589   :  { %v1762_v3 = vpop.f32.mrf.mxu0 }
0x158b   :  { %v3097_v26 = vpop.f32.mrf.mxu0 }
0x158c   :  { %v2219_v26 = vld [vmem:[%s4104_s0 + $0xf0] sm:$0xff] }
0x158d   :  { %v1767_v4 = vpop.f32.mrf.mxu0 }
0x158f   :  { %v3100_v6 = vpop.f32.mrf.mxu0 }
0x1590   :  { %v2218_v6 = vld [vmem:[%s4104_s0 + $0xe8] sm:$0xff] }
0x1591   :  { %v1772_v8 = vpop.f32.mrf.mxu0 }
0x1592   :  { %3105 = vmatpush3.msra.mxu1 %v1772_v8 }
0x1593   :  { %v3103_v9 = vpop.f32.mrf.mxu0  ;;  %3106 = vmatprep.subr.mxu1 %v3347_v2 }
0x1594   :  { %3107 = vmatpush3.msra.mxu1 %v1767_v4  ;;  %v1095_v4 = vmul.f32 %v1094_v0, %v3692_v17  ;;  %v2309_v17 = vld [vmem:[%s4104_s0 + $0x120] sm:$0xff]  ;;  %v2308_v9 = vld [vmem:[%s4104_s0 + $0x118] sm:$0xff] }
0x1595   :  { %3108 = vmatprep.subr.mxu1 %v3347_v2 }
0x1596   :  { %3109 = vmatpush3.msra.mxu1 %v1762_v3 }
0x1597   :  { %3111 = vmatmul.mubr.msk.f32.vlgmr.msra.gmra.mxu1 %vm1276_vm4, %v3708_v29  ;;  %3130 = vmatprep.subr.mxu1 %v3347_v2  ;;  %v1862_v29 = vld [vmem:[%s4104_s0 + $0xe0] sm:$0xff] }
0x1598   :  { %3113 = vmatprep.mubr.msk.f32.mxu1 %vm3348_vm1, %v3347_v2  ;;  %3120 = vmatpush3.msra.mxu0 %v1862_v29  ;;  %v2307_v29 = vld [vmem:[%s4104_s0 + $0x110] sm:$0xff] }
0x1599   :  { %3145 = vmatprep.subr.mxu0 %v3347_v2 }
0x159b   :  { %3114 = vmatmul.mubr.msk.f32.gmra.mxu1 %vm1276_vm4, %v3711_v31 }
0x159c   :  { %3116 = vmatprep.mubr.msk.f32.mxu1 %vm3348_vm1, %v3347_v2 }
0x159f   :  { %3117 = vmatmul.mubr.msk.f32.gmra.mxu1 %vm1276_vm4, %v3719_v32 }
0x15a0   :  { %3136 = vmatprep.mubr.msk.f32.mxu1 %vm3348_vm1, %v3347_v2 }
0x15be   :  { %v1091_v10 = vpop.permute.xlu1 %1090 }
0x15bf   :  { %v1093_v3 = vmul.f32 %v1091_v10, %v1060_v60 }
0x15c1   :  { %v1096_v8 = vadd.f32 %v1095_v4, %v1093_v3 }
0x1657   :  { %v1842_v58 = vpop.f32.mrf.mxu1 }
0x1658   :  { %3335 = vrcp.f32 %v1842_v58 }
0x1659   :  { %v3112_v11 = vpop.f32.mrf.mxu1 }
0x165a   :  { %v2306_v11 = vld [vmem:[%s4104_s0 + $0x108] sm:$0xff] }
0x165b   :  { %v1847_v31 = vpop.f32.mrf.mxu1 }
0x165c   :  { %3337 = vrcp.f32 %v1847_v31 }
0x165d   :  { %v3115_v12 = vpop.f32.mrf.mxu1 }
0x165f   :  { %v1852_v22 = vpop.f32.mrf.mxu1 }
0x1660   :  { %3339 = vrcp.f32 %v1852_v22 }
0x1661   :  { %v3118_v14 = vpop.f32.mrf.mxu1 }
0x1662   :  { %v2719_v14 = vld [vmem:[%s4106_s1 + $0x1] ss:$0 sm:$0xff] }
0x1665   :  { %v3336_v32 = vpop.eup %3335 }
0x1666   :  { %v1857_v15 = vmul.f32 %v3336_v32, %v3332_v59 }
0x1668   :  { %3122 = vmatmul.mubr.msk.f32.vlgmr.msra.gmra.mxu0 %vm1863_vm2, %v1857_v15 }
0x1669   :  { %v3338_v16 = vpop.eup %3337  ;;  %3124 = vmatprep.mubr.msk.f32.mxu0 %vm3348_vm1, %v3347_v2 }
0x166a   :  { %v1859_v19 = vmul.f32 %v3338_v16, %v3839_v55 }
0x166c   :  { %3125 = vmatmul.mubr.msk.f32.gmra.mxu0 %vm1863_vm2, %v1859_v19 }
0x166d   :  { %v3340_v18 = vpop.eup %3339  ;;  %3127 = vmatprep.mubr.msk.f32.mxu0 %vm3348_vm1, %v3347_v2 }
0x166e   :  { %v1861_v20 = vmul.f32 %v3340_v18, %v3834_v47  ;;  %v2391_v18 = vld [vmem:[%s4104_s0 + $0x140] sm:$0xff] }
0x1670   :  { %3128 = vmatmul.mubr.msk.f32.gmra.mxu0 %vm1863_vm2, %v1861_v20  ;;  %v2390_v20 = vld [vmem:[%s4104_s0 + $0x138] sm:$0xff] }
0x1671   :  { %3151 = vmatprep.mubr.msk.f32.mxu0 %vm3348_vm1, %v3347_v2 }
0x1728   :  { %v1939_v21 = vpop.f32.mrf.mxu0 }
0x1729   :  { %v1953_v37 = vmul.f32 %v1939_v21, %v3760_v45  ;;  %v2054_v45 = vmul.u32 10, %v3829_v28  ;;  %v2389_v21 = vld [vmem:[%s4104_s0 + $0x130] sm:$0xff] }
0x172a   :  { %v3123_v23 = vpop.f32.mrf.mxu0 }
0x172b   :  { %vm2055_vm3 = vcmp.ge.s32.totalorder %v3679_v1, %v2054_v45  ;;  %v2388_v23 = vld [vmem:[%s4104_s0 + $0x128] sm:$0xff] }
0x172c   :  { %v1944_v25 = vpop.f32.mrf.mxu0 }
0x172d   :  { %v1954_v36 = vmul.f32 %v3758_v44, %v1944_v25  ;;  %v2056_v44 = vadd.s32 1, %v3829_v28  ;;  %v2395_v25 = vld [vmem:[%s4104_s0 + $0x160] sm:$0xff] }
0x172e   :  { %v3126_v27 = vpop.f32.mrf.mxu0 }
0x172f   :  { %v2394_v27 = vld [vmem:[%s4104_s0 + $0x158] sm:$0xff] }
0x1730   :  { %v1949_v34 = vpop.f32.mrf.mxu0 }
0x1731   :  { %v1955_v35 = vmul.f32 %v1949_v34, %v3773_v24  ;;  %v2057_v24 = vmul.u32 10, %v2056_v44  ;;  %v2393_v34 = vld [vmem:[%s4104_s0 + $0x150] sm:$0xff] }
0x1732   :  { %v3129_v33 = vpop.f32.mrf.mxu0 }
0x1733   :  { %3131 = vmatpush3.msra.mxu1 %v1955_v35  ;;  %vm2058_vm5 = vcmp.lt.s32.totalorder %v3679_v1, %v2057_v24  ;;  %v2392_v35 = vld [vmem:[%s4104_s0 + $0x148] sm:$0xff] }
0x1734   :  { %3132 = vmatprep.subr.mxu1 %v3347_v2  ;;  %vm2059_vm6 = vmand %vm2055_vm3, %vm2058_vm5 }
0x1735   :  { %3133 = vmatpush3.msra.mxu1 %v1954_v36  ;;  %vm3927_vm8 = vmand %vm2059_vm6, %vm2060_vm7 }
0x1736   :  { %3134 = vmatprep.subr.mxu1 %v3347_v2  ;;  %v2715_v61 = vsel %vm3927_vm8, 1.0, %v3347_v2 }
0x1737   :  { %3135 = vmatpush3.msra.mxu1 %v1953_v37  ;;  %v2721_v37 = vld [vmem:[%s4106_s1 + $0x2] ss:$0 sm:$0xff] }
0x1738   :  { %3137 = vmatmul.mubr.msk.f32.vlgmr.msra.gmra.mxu1 %vm1276_vm4, %v3845_v57  ;;  %3154 = vmatprep.subr.mxu1 %v3347_v2 }
0x1739   :  { %3155 = vmatpush3.msra.mxu1 %v3802_v53  ;;  %3139 = vmatprep.mubr.msk.f32.mxu1 %vm3348_vm1, %v3347_v2  ;;  %v2064_v53 = vmul.u32 12, %v3829_v28 }
0x173a   :  { %3156 = vmatprep.subr.mxu1 %v3347_v2 }
0x173b   :  { %3157 = vmatpush3.msra.mxu1 %v3808_v54  ;;  %v2066_v54 = vmul.u32 12, %v2056_v44  ;;  %vm2065_vm9 = vcmp.ge.s32.totalorder %v3679_v1, %v2064_v53 }
0x173c   :  { %3140 = vmatmul.mubr.msk.f32.gmra.mxu1 %vm1276_vm4, %v3855_v7  ;;  %3158 = vmatprep.subr.mxu1 %v3347_v2 }
0x173d   :  { %3159 = vmatpush3.msra.mxu1 %v3651_v51  ;;  %3142 = vmatprep.mubr.msk.f32.mxu1 %vm3348_vm1, %v3347_v2  ;;  %vm2067_vm10 = vcmp.lt.s32.totalorder %v3679_v1, %v2066_v54  ;;  %v2565_v51 = vld [vmem:[%s4104_s0 + $0x1e0] sm:$0xff]  ;;  %v2564_v54 = vld [vmem:[%s4104_s0 + $0x1d8] sm:$0xff] }
0x173e   :  { %3174 = vmatprep.subr.mxu1 %v3347_v2  ;;  %vm2068_vm11 = vmand %vm2065_vm9, %vm2067_vm10 }
0x173f   :  { %vm2069_vm12 = vmand %vm2068_vm11, %vm2060_vm7 }
0x1740   :  { %3143 = vmatmul.mubr.msk.f32.gmra.mxu1 %vm1276_vm4, %v3862_v62  ;;  %v2716_v38 = vsel %vm2069_vm12, 1.0, %v3347_v2  ;;  %v2221_v62 = vld [vmem:[%s4104_s0 + $0x100] sm:$0xff] }
0x1741   :  { %3160 = vmatprep.mubr.msk.f32.mxu1 %vm3348_vm1, %v3347_v2 }
0x1744   :  { %3161 = vmatmul.mubr.msk.f32.vlgmr.msra.gmra.mxu1 %vm1276_vm4, %v2716_v38  ;;  %v2563_v38 = vld [vmem:[%s4104_s0 + $0x1d0] sm:$0xff] }
0x1745   :  { %3182 = vmatprep.mubr.msk.f32.mxu1 %vm3348_vm1, %v3347_v2  ;;  %3175 = vmatpush3.msra.mxu1 %v2309_v17 }
0x1746   :  { %3176 = vmatprep.subr.mxu1 %v3347_v2 }
0x1747   :  { %3177 = vmatpush3.msra.mxu1 %v2308_v9 }
0x1748   :  { %3178 = vmatprep.subr.mxu1 %v3347_v2 }
0x1749   :  { %3179 = vmatpush3.msra.mxu1 %v2307_v29 }
0x174a   :  { %3180 = vmatprep.subr.mxu1 %v3347_v2 }
0x174b   :  { %3181 = vmatpush3.msra.mxu1 %v2306_v11 }
0x174c   :  { %3196 = vmatprep.subr.mxu1 %v3347_v2 }
0x17f8   :  { %v2022_v39 = vpop.f32.mrf.mxu1 }
0x17f9   :  { %v2039_v41 = vmin.f32 %v2022_v39, 0.0  ;;  %vm2036_vm15 = vcmp.gt.f32.partialorder %v2022_v39, 0.0 }
0x17fa   :  { %v3138_v40 = vpop.f32.mrf.mxu1 }
0x17fb   :  { %v2042_v30 = vmul.f32 1.442695, %v2039_v41  ;;  %v2561_v40 = vld [vmem:[%s4104_s0 + $0x1c0] sm:$0xff]  ;;  %v2560_v41 = vld [vmem:[%s4104_s0 + $0x1b8] sm:$0xff] }
0x17fc   :  { %v2027_v42 = vpop.f32.mrf.mxu1 }
0x17fd   :  { %v2040_v43 = vmin.f32 %v2027_v42, 0.0  ;;  %vm2037_vm14 = vcmp.gt.f32.partialorder %v2027_v42, 0.0 }
0x17fe   :  { %v3141_v28 = vpop.f32.mrf.mxu1 }
0x17ff   :  { %v2044_v46 = vmul.f32 1.442695, %v2040_v43  ;;  %v2558_v43 = vld [vmem:[%s4104_s0 + $0x1a8] sm:$0xff]  ;;  %v2557_v28 = vld [vmem:[%s4104_s0 + $0x1a0] sm:$0xff] }
0x1800   :  { %v2032_v47 = vpop.f32.mrf.mxu1 }
0x1801   :  { %v2041_v48 = vmin.f32 %v2032_v47, 0.0  ;;  %3341 = vpow2.f32 %v2044_v46  ;;  %vm2038_vm13 = vcmp.gt.f32.partialorder %v2032_v47, 0.0  ;;  %v2556_v46 = vld [vmem:[%s4104_s0 + $0x198] sm:$0xff] }
0x1802   :  { %v3144_v1 = vpop.f32.mrf.mxu1  ;;  %3343 = vpow2.f32 %v2042_v30  ;;  %v2555_v30 = vld [vmem:[%s4104_s0 + $0x190] sm:$0xff] }
0x1803   :  { %v2046_v49 = vmul.f32 1.442695, %v2041_v48  ;;  %v2553_v48 = vld [vmem:[%s4104_s0 + $0x180] sm:$0xff]  ;;  %v2552_v1 = vld [vmem:[%s4104_s0 + $0x178] sm:$0xff] }
0x1804   :  { %v2214_v58 = vpop.f32.mrf.mxu1 }
0x1805   :  { %3345 = vpow2.f32 %v2046_v49  ;;  %v2551_v49 = vld [vmem:[%s4104_s0 + $0x170] sm:$0xff] }
0x1806   :  { %v3162_v31 = vpop.f32.mrf.mxu1 }
0x180e   :  { %v3342_v50 = vpop.eup %3341 }
0x180f   :  { %v3344_v52 = vpop.eup %3343  ;;  %v2713_v56 = vadd.f32 -1.0, %v3342_v50  ;;  %v2550_v50 = vld [vmem:[%s4104_s0 + $0x168] sm:$0xff] }
0x1810   :  { %v2712_v59 = vadd.f32 -1.0, %v3344_v52 }
0x1811   :  { %v2052_v5 = vsel %vm2037_vm14, %v2027_v42, %v2713_v56  ;;  %v2559_v42 = vld [vmem:[%s4104_s0 + $0x1b0] sm:$0xff]  ;;  %v2725_v56 = vld [vmem:[%s4106_s1 + $0x3] ss:$0 sm:$0xff] }
0x1812   :  { %v3346_v55 = vpop.eup %3345  ;;  %v2051_v7 = vsel %vm2036_vm15, %v2022_v39, %v2712_v59  ;;  %v2562_v39 = vld [vmem:[%s4104_s0 + $0x1c8] sm:$0xff] }
0x1813   :  { %v2714_v63 = vadd.f32 -1.0, %v3346_v55 }
0x1815   :  { %v2053_v57 = vsel %vm2038_vm13, %v2032_v47, %v2714_v63  ;;  %v2554_v47 = vld [vmem:[%s4104_s0 + $0x188] sm:$0xff] }
0x1816   :  { %3146 = vmatpush3.msra.mxu0 %v2053_v57 }
0x1817   :  { %3147 = vmatprep.subr.mxu0 %v3347_v2 }
0x1818   :  { %3148 = vmatpush3.msra.mxu0 %v2052_v5 }
0x1819   :  { %3149 = vmatprep.subr.mxu0 %v3347_v2 }
0x181a   :  { %3150 = vmatpush3.msra.mxu0 %v2051_v7 }
0x181b   :  { %3152 = vmatmul.mubr.msk.f32.vlgmr.msra.gmra.mxu0 %vm1276_vm4, %v2715_v61  ;;  %3163 = vmatprep.subr.mxu0 %v3347_v2 }
0x181c   :  { %3164 = vmatpush3.msra.mxu0 %v2221_v62  ;;  %3171 = vmatprep.mubr.msk.f32.mxu0 %vm3348_vm1, %v3347_v2 }
0x181d   :  { %3165 = vmatprep.subr.mxu0 %v3347_v2 }
0x181e   :  { %3166 = vmatpush3.msra.mxu0 %v2220_v13 }
0x181f   :  { %3167 = vmatprep.subr.mxu0 %v3347_v2 }
0x1820   :  { %3168 = vmatpush3.msra.mxu0 %v2219_v26 }
0x1821   :  { %3169 = vmatprep.subr.mxu0 %v3347_v2 }
0x1822   :  { %3170 = vmatpush3.msra.mxu0 %v2218_v6 }
0x1823   :  { %3172 = vmatmul.mubr.msk.f32.vlgmr.msra.gmra.mxu0 %vm31_vm0, %v1096_v8  ;;  %3185 = vmatprep.subr.mxu0 %v3347_v2 }
0x1824   :  { %3193 = vmatprep.mubr.msk.f32.mxu0 %vm3348_vm1, %v3347_v2  ;;  %3186 = vmatpush3.msra.mxu0 %v2395_v25 }
0x1825   :  { %3187 = vmatprep.subr.mxu0 %v3347_v2 }
0x1826   :  { %3188 = vmatpush3.msra.mxu0 %v2394_v27 }
0x1827   :  { %3189 = vmatprep.subr.mxu0 %v3347_v2 }
0x1828   :  { %3190 = vmatpush3.msra.mxu0 %v2393_v34 }
0x1829   :  { %3191 = vmatprep.subr.mxu0 %v3347_v2 }
0x182a   :  { %3192 = vmatpush3.msra.mxu0 %v2392_v35 }
0x182b   :  { %3207 = vmatprep.subr.mxu0 %v3347_v2 }
0x18db   :  { %v2141_v12 = vpop.f32.mrf.mxu0 }
0x18dc   :  { %2302 = vrot.lane.b32.xlu0 %v2141_v12, %s3350_s20 }
0x18dd   :  { %v3153_v22 = vpop.f32.mrf.mxu0 }
0x18e3   :  { %v2296_v32 = vpop.f32.mrf.mxu0 }
0x18e4   :  { %v2297_v15 = vadd.f32 %v2719_v14, %v2296_v32 }
0x18e5   :  { %v3173_v16 = vpop.f32.mrf.mxu0 }
0x18e6   :  { %v2300_v19 = vadd.f32 %v2297_v15, %v2214_v58 }
0x18e8   :  { %3183 = vmatmul.mubr.msk.f32.vlgmr.msra.gmra.mxu1 %vm31_vm0, %v2300_v19 }
0x18e9   :  { %3197 = vmatpush3.msra.mxu1 %v2391_v18  ;;  %3204 = vmatprep.mubr.msk.f32.mxu1 %vm3348_vm1, %v3347_v2 }
0x18ea   :  { %3198 = vmatprep.subr.mxu1 %v3347_v2 }
0x18eb   :  { %3199 = vmatpush3.msra.mxu1 %v2390_v20 }
0x18ec   :  { %3200 = vmatprep.subr.mxu1 %v3347_v2 }
0x18ed   :  { %3201 = vmatpush3.msra.mxu1 %v2389_v21 }
0x18ee   :  { %3202 = vmatprep.subr.mxu1 %v3347_v2 }
0x18ef   :  { %3203 = vmatpush3.msra.mxu1 %v2388_v23 }
0x194e   :  { %v2303_v33 = vpop.permute.xlu0 %2302 }
0x194f   :  { %v2305_v36 = vadd.f32 %v2303_v33, %v2297_v15 }
0x1951   :  { %2397 = vrot.lane.b32.xlu1 %v2305_v36, %s3351_s21 }
0x19a8   :  { %v2384_v44 = vpop.f32.mrf.mxu1 }
0x19a9   :  { %v2385_v45 = vadd.f32 %v2721_v37, %v2384_v44 }
0x19aa   :  { %v3184_v24 = vpop.f32.mrf.mxu1 }
0x19ab   :  { %3205 = vmatmul.mubr.msk.f32.vlgmr.msra.gmra.mxu1 %vm31_vm0, %v2385_v45 }
0x19c3   :  { %v2398_v53 = vpop.permute.xlu1 %2397 }
0x19c4   :  { %3194 = vmatmul.mubr.msk.f32.vlgmr.msra.gmra.mxu0 %vm31_vm0, %v2398_v53 }
0x19c5   :  { %3208 = vmatpush3.msra.mxu0 %v2565_v51  ;;  %3239 = vmatprep.mubr.msk.f32.mxu0 %vm3348_vm1, %v3347_v2 }
0x19c6   :  { %3209 = vmatprep.subr.mxu0 %v3347_v2 }
0x19c7   :  { %3210 = vmatpush3.msra.mxu0 %v2564_v54 }
0x19c8   :  { %3211 = vmatprep.subr.mxu0 %v3347_v2 }
0x19c9   :  { %3212 = vmatpush3.msra.mxu0 %v2563_v38 }
0x19ca   :  { %3213 = vmatprep.subr.mxu0 %v3347_v2 }
0x19cb   :  { %3214 = vmatpush3.msra.mxu0 %v2562_v39 }
0x19cc   :  { %3215 = vmatprep.subr.mxu0 %v3347_v2 }
0x19cd   :  { %3216 = vmatpush3.msra.mxu0 %v2561_v40 }
0x19ce   :  { %3217 = vmatprep.subr.mxu0 %v3347_v2 }
0x19cf   :  { %3218 = vmatpush3.msra.mxu0 %v2560_v41 }
0x19d0   :  { %3219 = vmatprep.subr.mxu0 %v3347_v2 }
0x19d1   :  { %3220 = vmatpush3.msra.mxu0 %v2559_v42 }
0x19d2   :  { %3221 = vmatprep.subr.mxu0 %v3347_v2 }
0x19d3   :  { %3222 = vmatpush3.msra.mxu0 %v2558_v43 }
0x19d4   :  { %3223 = vmatprep.subr.mxu0 %v3347_v2 }
0x19d5   :  { %3224 = vmatpush3.msra.mxu0 %v2557_v28 }
0x19d6   :  { %3225 = vmatprep.subr.mxu0 %v3347_v2 }
0x19d7   :  { %3226 = vmatpush3.msra.mxu0 %v2556_v46 }
0x19d8   :  { %3227 = vmatprep.subr.mxu0 %v3347_v2 }
0x19d9   :  { %3228 = vmatpush3.msra.mxu0 %v2555_v30 }
0x19da   :  { %3229 = vmatprep.subr.mxu0 %v3347_v2 }
0x19db   :  { %3230 = vmatpush3.msra.mxu0 %v2554_v47 }
0x19dc   :  { %3231 = vmatprep.subr.mxu0 %v3347_v2 }
0x19dd   :  { %3232 = vmatpush3.msra.mxu0 %v2553_v48 }
0x19de   :  { %3233 = vmatprep.subr.mxu0 %v3347_v2 }
0x19df   :  { %3234 = vmatpush3.msra.mxu0 %v2552_v1 }
0x19e0   :  { %3235 = vmatprep.subr.mxu0 %v3347_v2 }
0x19e1   :  { %3236 = vmatpush3.msra.mxu0 %v2551_v49 }
0x19e2   :  { %3237 = vmatprep.subr.mxu0 %v3347_v2  ;;  %v2726_v2 = vld [vmem:[%s4106_s1 + $0x4] ss:$0 sm:$0xff] }
0x19e3   :  { %3238 = vmatpush3.msra.mxu0 %v2550_v50 }
0x1a6b   :  { %v2540_v52 = vpop.f32.mrf.mxu1 }
0x1a6d   :  { %v3206_v55 = vpop.f32.mrf.mxu1 }
0x1a84   :  { %v2467_v63 = vpop.f32.mrf.mxu0 }
0x1a85   :  { %v2541_v57 = vadd.f32 %v2540_v52, %v2467_v63 }
0x1a86   :  { %v3195_v59 = vpop.f32.mrf.mxu0 }
0x1a87   :  { %v2549_v5 = vadd.f32 %v2725_v56, %v2541_v57 }
0x1a89   :  { %3240 = vmatmul.mubr.f32.vlgmr.msra.gmra.mxu0 %v2549_v5 }
0x1b49   :  { %v2637_v60 = vpop.f32.mrf.mxu0 }
0x1b4a   :  { %v2638_v61 = vadd.f32 %v2726_v2, %v2637_v60 }
0x1b4b   :  { %v3241_v7 = vpop.f32.mrf.mxu0 }
0x1b4c   :  { %2641 = vst [vmem:[%s4107_s3] sm:$0xff] %v2638_v61 }

</bundles_post_ra>
